<compile_context>
chip_gen: v7x
topology: tpu7x:2x2x1
jax: 0.10.0
libtpu: 0.0.40
codegen_flags: <defaults>
</compile_context>

<pallas_src>
import math

import jax
import jax.numpy as jnp
from jax import lax
from jax.experimental import pallas as pl
from jax.experimental.pallas import tpu as pltpu


def _lstm_disc_kernel(x_ref, wih_ref, whh_ref, b_ref, wlin_ref, blin_ref,
                      out_ref, gx_scr, hs_scr, h_scr, c_scr):
    ti = pl.program_id(1)

    Bb, H = h_scr.shape
    rows = gx_scr.shape[0]            # Tc * Bb
    Tc = rows // Bb
    D = x_ref.shape[1]
    wd = wih_ref.dtype                # bf16 at production sizes, f32 here

    # ---- new sequence: zero-init recurrent carry (PyTorch default LSTM state).
    @pl.when(ti == 0)
    def _():
        h_scr[...] = jnp.zeros_like(h_scr)
        c_scr[...] = jnp.zeros_like(c_scr)

    # ---- hoisted input projection for the whole time chunk (off the serial
    # path).  For tiny D a K=D MXU matmul wastes the array, so use a short VPU
    # FMA chain instead; at production D (>=128) take the MXU path.
    if D < 8:
        x = x_ref[...].astype(jnp.float32)
        wih = wih_ref[...].astype(jnp.float32)
        acc = jnp.broadcast_to(b_ref[...], (rows, 4 * H)).astype(jnp.float32)
        for d in range(D):                                    # trace-time loop
            acc = acc + x[:, d:d + 1] * wih[d:d + 1, :]
        gx_scr[...] = acc
    else:
        gx_scr[...] = jnp.dot(
            x_ref[...].astype(wd), wih_ref[...],
            preferred_element_type=jnp.float32) + b_ref[...]

    whh = whh_ref[...]                                        # resident (H, 4H)

    def step(t, carry):
        h, c = carry
        row = pl.multiple_of(t * Bb, Bb)                      # sublane-aligned
        gates = gx_scr[pl.ds(row, Bb), :] + jnp.dot(
            h.astype(wd), whh, preferred_element_type=jnp.float32)
        # PyTorch gate order: input, forget, cell(g), output.  f32 gate math
        # (v5e has no bf16 VPU/EUP).
        i_g = jax.nn.sigmoid(gates[:, 0 * H:1 * H])
        f_g = jax.nn.sigmoid(gates[:, 1 * H:2 * H])
        g_g = jnp.tanh(gates[:, 2 * H:3 * H])
        o_g = jax.nn.sigmoid(gates[:, 3 * H:4 * H])
        c_new = f_g * c + i_g * g_g
        h_new = o_g * jnp.tanh(c_new)
        hs_scr[pl.ds(row, Bb), :] = h_new                     # stash h_t
        return h_new, c_new

    # Bounded unroll: LLO visibility without blowing past the 64-vreg file.
    h_fin, c_fin = lax.fori_loop(0, Tc, step, (h_scr[...], c_scr[...]),
                                 unroll=min(Tc, 8))
    h_scr[...] = h_fin                                        # carry to next chunk
    c_scr[...] = c_fin

    # ---- batched epilogue: LeakyReLU(0.01) -> Linear -> Sigmoid, one store.
    hs = hs_scr[...]                                          # (rows, H)
    y = jnp.where(hs > 0, hs, 0.01 * hs)
    # Lane-dense logits: contract H, keep (time*batch) rows on the lane axis.
    logits = lax.dot_general(
        wlin_ref[...], y.astype(wd),
        dimension_numbers=(((1,), (1,)), ((), ())),
        preferred_element_type=jnp.float32) + blin_ref[...]   # (O, rows)
    out_ref[0] = jax.nn.sigmoid(logits)


def discriminator_forward(x, w_ih, w_hh, b_ih, b_hh, w_lin, b_lin,
                          *, b_chunk=8, t_chunk=128):
    """LSTM(batch_first) -> LeakyReLU -> Linear -> Sigmoid.

    x: (B, T, D) f32.  Weights in PyTorch layout:
      w_ih (4H, D), w_hh (4H, H), b_ih (4H,), b_hh (4H,), w_lin (O, H), b_lin (O,).
    Returns (B, T, O) f32 probabilities.
    """
    B, T, D = x.shape
    H = w_hh.shape[1]
    O = w_lin.shape[0]

    # --- chunking -------------------------------------------------------------
    Bb = max(8, (b_chunk // 8) * 8)                 # f32 sublane tile
    Bp = ((B + Bb - 1) // Bb) * Bb
    n_b = Bp // Bb

    if T > t_chunk:
        # With more than one time chunk the lane-dense output block needs
        # Tc*Bb % 128 == 0.
        m = 128 // math.gcd(Bb, 128)
        Tc = max(m, (t_chunk // m) * m)
    else:
        Tc = T
    Tp = ((T + Tc - 1) // Tc) * Tc
    n_t = Tp // Tc
    rows = Tc * Bb

    # --- weight prep (PyTorch layout -> kernel layout) ------------------------
    # bf16 weights at production sizes (halves DMA, ~2x MXU); gate math stays f32.
    w_dtype = jnp.bfloat16 if (H >= 128 and D >= 128) else jnp.float32
    wih_t = jnp.transpose(w_ih).astype(w_dtype)                 # (D, 4H)
    whh_t = jnp.transpose(w_hh).astype(w_dtype)                 # (H, 4H)
    b_gates = (b_ih + b_hh).reshape(1, 4 * H).astype(jnp.float32)
    wlin = w_lin.astype(w_dtype)                                # (O, H)
    blin = b_lin.reshape(O, 1).astype(jnp.float32)              # (O, 1)

    # --- x layout: (n_b, Tp, Bb, D) flattened so each (bi, ti) chunk is a
    # contiguous, sublane-aligned slab of Tc*Bb rows. --------------------------
    x_p = jnp.pad(x.astype(jnp.float32),
                  ((0, Bp - B), (0, Tp - T), (0, 0)))           # (Bp, Tp, D)
    x2 = (x_p.reshape(n_b, Bb, Tp, D)
              .transpose(0, 2, 1, 3)
              .reshape(n_b * Tp * Bb, D))                       # (n_b*Tp*Bb, D)

    # --- explicit VMEM budget (re-derived per shape; keeps v7x 64 MiB happy) --
    wbytes = jnp.dtype(w_dtype).itemsize
    budget = (2 * (rows * D * 4 + O * rows * 4)             # 2x-buffered x / out
              + rows * 4 * H * 4 + rows * H * 4             # gx_scr + hs_scr
              + 2 * Bb * H * 4                              # h/c carry
              + (D * 4 * H + H * 4 * H + O * H) * wbytes    # weights
              + (4 * H + O) * 4
              + (4 << 20))                                  # headroom
    vmem_limit = int(min(max(budget, 32 * 2**20), 128 * 2**20))

    out_flat = pl.pallas_call(
        _lstm_disc_kernel,
        out_shape=jax.ShapeDtypeStruct((n_b, O, Tp * Bb), jnp.float32),
        grid=(n_b, n_t),
        in_specs=[
            pl.BlockSpec((rows, D), lambda bi, ti: (bi * n_t + ti, 0)),
            pl.BlockSpec((D, 4 * H), lambda bi, ti: (0, 0)),
            pl.BlockSpec((H, 4 * H), lambda bi, ti: (0, 0)),
            pl.BlockSpec((1, 4 * H), lambda bi, ti: (0, 0)),
            pl.BlockSpec((O, H), lambda bi, ti: (0, 0)),
            pl.BlockSpec((O, 1), lambda bi, ti: (0, 0)),
        ],
        out_specs=pl.BlockSpec((1, O, rows), lambda bi, ti: (bi, 0, ti)),
        scratch_shapes=[
            pltpu.VMEM((rows, 4 * H), jnp.float32),   # hoisted x-projection
            pltpu.VMEM((rows, H), jnp.float32),       # per-step hidden states
            pltpu.VMEM((Bb, H), jnp.float32),         # h carry (persistent)
            pltpu.VMEM((Bb, H), jnp.float32),         # c carry (persistent)
        ],
        compiler_params=pltpu.CompilerParams(
            dimension_semantics=("parallel", "arbitrary"),
            vmem_limit_bytes=vmem_limit,
        ),
    )(x2, wih_t, whh_t, b_gates, wlin, blin)

    # (n_b, O, Tp*Bb) -> (Bp, Tp, O) -> drop padding -> (B, T, O)
    out = (out_flat.reshape(n_b, O, n_t, Tc, Bb)
                   .transpose(0, 4, 2, 3, 1)
                   .reshape(Bp, Tp, O))
    return out[:B, :T, :]


def reference_forward(x, w_ih, w_hh, b_ih, b_hh, w_lin, b_lin):
    """Pure-JAX reference (lax.scan LSTM) matching PyTorch semantics."""
    B, T, D = x.shape
    H = w_hh.shape[1]
    wih_t, whh_t = w_ih.T, w_hh.T
    b = (b_ih + b_hh)[None, :]

    def step(carry, x_t):
        h, c = carry
        gates = x_t @ wih_t + h @ whh_t + b
        i_g = jax.nn.sigmoid(gates[:, 0 * H:1 * H])
        f_g = jax.nn.sigmoid(gates[:, 1 * H:2 * H])
        g_g = jnp.tanh(gates[:, 2 * H:3 * H])
        o_g = jax.nn.sigmoid(gates[:, 3 * H:4 * H])
        c_new = f_g * c + i_g * g_g
        h_new = o_g * jnp.tanh(c_new)
        return (h_new, c_new), h_new

    h0 = jnp.zeros((B, H), jnp.float32)
    c0 = jnp.zeros((B, H), jnp.float32)
    _, hs = lax.scan(step, (h0, c0), jnp.transpose(x, (1, 0, 2)))
    hs = jnp.transpose(hs, (1, 0, 2))                           # (B, T, H)
    y = jnp.where(hs > 0, hs, 0.01 * hs)
    return jax.nn.sigmoid(y @ w_lin.T + b_lin[None, None, :])


if __name__ == "__main__":
    # Small shapes consistent with the module (input_dim, hidden_size, output_dim).
    B, T, D, H, O = 2, 8, 4, 32, 1

    key = jax.random.PRNGKey(0)
    ks = jax.random.split(key, 7)

    # Deterministic synthetic parameters in PyTorch layout.
    w_ih = 0.1 * jax.random.normal(ks[0], (4 * H, D), jnp.float32)   # LSTM weight_ih_l0
    w_hh = 0.1 * jax.random.normal(ks[1], (4 * H, H), jnp.float32)   # LSTM weight_hh_l0
    b_ih = 0.1 * jax.random.normal(ks[2], (4 * H,), jnp.float32)
    b_hh = 0.1 * jax.random.normal(ks[3], (4 * H,), jnp.float32)
    w_lin = 0.1 * jax.random.normal(ks[4], (O, H), jnp.float32)      # Linear weight
    b_lin = 0.1 * jax.random.normal(ks[5], (O,), jnp.float32)

    z = jax.random.normal(ks[6], (B, T, D), jnp.float32)

    out = discriminator_forward(z, w_ih, w_hh, b_ih, b_hh, w_lin, b_lin)
    out = jax.block_until_ready(out)

    ref = reference_forward(z, w_ih, w_hh, b_ih, b_hh, w_lin, b_lin)
    assert out.shape == (B, T, O)
    assert jnp.allclose(out, ref, atol=1e-5, rtol=1e-5), "mismatch vs JAX reference"

    print("KERNEL_OK")
</pallas_src>

<mosaic_0001>
module attributes {stable_mosaic.version = 11 : i64} {
  func.func @_lstm_disc_kernel(%arg0: i32, %arg1: i32, %arg2: memref<64x4xf32, #tpu.memory_space<vmem>>, %arg3: memref<4x128xf32, #tpu.memory_space<vmem>>, %arg4: memref<32x128xf32, #tpu.memory_space<vmem>>, %arg5: memref<1x128xf32, #tpu.memory_space<vmem>>, %arg6: memref<1x32xf32, #tpu.memory_space<vmem>>, %arg7: memref<1x1xf32, #tpu.memory_space<vmem>>, %arg8: memref<1x1x64xf32, #tpu.memory_space<vmem>>, %arg9: memref<64x128xf32, #tpu.memory_space<vmem>>, %arg10: memref<64x32xf32, #tpu.memory_space<vmem>>, %arg11: memref<8x32xf32, #tpu.memory_space<vmem>>, %arg12: memref<8x32xf32, #tpu.memory_space<vmem>>) attributes {dimension_semantics = [#tpu.dimension_semantics<parallel>, #tpu.dimension_semantics<arbitrary>], iteration_bounds = array<i64: 1, 1>, scalar_prefetch = 0 : i64, scratch_operands = 4 : i64, tpu.core_type = #tpu.core_type<tc>, window_params = [{transform_indices = @transform_0, window_bounds = array<i64: 64, 4>}, {pipeline_mode = #tpu.pipeline_mode<synchronous>, transform_indices = @transform_1, window_bounds = array<i64: 4, 128>}, {pipeline_mode = #tpu.pipeline_mode<synchronous>, transform_indices = @transform_2, window_bounds = array<i64: 32, 128>}, {pipeline_mode = #tpu.pipeline_mode<synchronous>, transform_indices = @transform_3, window_bounds = array<i64: 1, 128>}, {pipeline_mode = #tpu.pipeline_mode<synchronous>, transform_indices = @transform_4, window_bounds = array<i64: 1, 32>}, {pipeline_mode = #tpu.pipeline_mode<synchronous>, transform_indices = @transform_5, window_bounds = array<i64: 1, 1>}, {transform_indices = @transform_6, window_bounds = array<i64: 1, 1, 64>}]} {
    %c0_i32 = arith.constant 0 : i32
    %0 = arith.cmpi eq, %arg1, %c0_i32 : i32
    %1 = arith.extui %0 : i1 to i32
    %c0_i32_0 = arith.constant 0 : i32
    %2 = arith.cmpi ne, %1, %c0_i32_0 : i32
    scf.if %2 {
      %cst_87 = arith.constant 0.000000e+00 : f32
      %321 = vector.broadcast %cst_87 : f32 to vector<8x32xf32>
      %c0_88 = arith.constant 0 : index
      %c0_89 = arith.constant 0 : index
      %322 = vector.load %arg11[%c0_88, %c0_89] : memref<8x32xf32, #tpu.memory_space<vmem>>, vector<8x32xf32>
      tpu.vector_store %arg11[%c0_88, %c0_89], %321 {strides = array<i32>} : memref<8x32xf32, #tpu.memory_space<vmem>>, vector<8x32xf32>,
      %cst_90 = arith.constant 0.000000e+00 : f32
      %323 = vector.broadcast %cst_90 : f32 to vector<8x32xf32>
      %c0_91 = arith.constant 0 : index
      %c0_92 = arith.constant 0 : index
      %324 = vector.load %arg12[%c0_91, %c0_92] : memref<8x32xf32, #tpu.memory_space<vmem>>, vector<8x32xf32>
      tpu.vector_store %arg12[%c0_91, %c0_92], %323 {strides = array<i32>} : memref<8x32xf32, #tpu.memory_space<vmem>>, vector<8x32xf32>,
    } else {
    }
    %c0 = arith.constant 0 : index
    %c0_1 = arith.constant 0 : index
    %3 = vector.load %arg2[%c0, %c0_1] : memref<64x4xf32, #tpu.memory_space<vmem>>, vector<64x4xf32>
    %c0_2 = arith.constant 0 : index
    %c0_3 = arith.constant 0 : index
    %4 = vector.load %arg3[%c0_2, %c0_3] : memref<4x128xf32, #tpu.memory_space<vmem>>, vector<4x128xf32>
    %c0_4 = arith.constant 0 : index
    %c0_5 = arith.constant 0 : index
    %5 = vector.load %arg5[%c0_4, %c0_5] : memref<1x128xf32, #tpu.memory_space<vmem>>, vector<1x128xf32>
    %6 = vector.shape_cast %5 : vector<1x128xf32> to vector<1x128xf32>
    %7 = vector.broadcast %6 : vector<1x128xf32> to vector<64x128xf32>
    %8 = vector.extract_strided_slice %3 {offsets = [0, 0], sizes = [64, 1], strides = [1, 1]} : vector<64x4xf32> to vector<64x1xf32>
    %9 = vector.extract_strided_slice %4 {offsets = [0, 0], sizes = [1, 128], strides = [1, 1]} : vector<4x128xf32> to vector<1x128xf32>
    %10 = vector.broadcast %8 : vector<64x1xf32> to vector<64x128xf32>
    %11 = vector.broadcast %9 : vector<1x128xf32> to vector<64x128xf32>
    %12 = arith.mulf %10, %11 : vector<64x128xf32>
    %13 = arith.addf %7, %12 : vector<64x128xf32>
    %14 = vector.extract_strided_slice %3 {offsets = [0, 1], sizes = [64, 1], strides = [1, 1]} : vector<64x4xf32> to vector<64x1xf32>
    %15 = vector.extract_strided_slice %4 {offsets = [1, 0], sizes = [1, 128], strides = [1, 1]} : vector<4x128xf32> to vector<1x128xf32>
    %16 = vector.broadcast %14 : vector<64x1xf32> to vector<64x128xf32>
    %17 = vector.broadcast %15 : vector<1x128xf32> to vector<64x128xf32>
    %18 = arith.mulf %16, %17 : vector<64x128xf32>
    %19 = arith.addf %13, %18 : vector<64x128xf32>
    %20 = vector.extract_strided_slice %3 {offsets = [0, 2], sizes = [64, 1], strides = [1, 1]} : vector<64x4xf32> to vector<64x1xf32>
    %21 = vector.extract_strided_slice %4 {offsets = [2, 0], sizes = [1, 128], strides = [1, 1]} : vector<4x128xf32> to vector<1x128xf32>
    %22 = vector.broadcast %20 : vector<64x1xf32> to vector<64x128xf32>
    %23 = vector.broadcast %21 : vector<1x128xf32> to vector<64x128xf32>
    %24 = arith.mulf %22, %23 : vector<64x128xf32>
    %25 = arith.addf %19, %24 : vector<64x128xf32>
    %26 = vector.extract_strided_slice %3 {offsets = [0, 3], sizes = [64, 1], strides = [1, 1]} : vector<64x4xf32> to vector<64x1xf32>
    %27 = vector.extract_strided_slice %4 {offsets = [3, 0], sizes = [1, 128], strides = [1, 1]} : vector<4x128xf32> to vector<1x128xf32>
    %28 = vector.broadcast %26 : vector<64x1xf32> to vector<64x128xf32>
    %29 = vector.broadcast %27 : vector<1x128xf32> to vector<64x128xf32>
    %30 = arith.mulf %28, %29 : vector<64x128xf32>
    %31 = arith.addf %25, %30 : vector<64x128xf32>
    %c0_6 = arith.constant 0 : index
    %c0_7 = arith.constant 0 : index
    %32 = vector.load %arg9[%c0_6, %c0_7] : memref<64x128xf32, #tpu.memory_space<vmem>>, vector<64x128xf32>
    tpu.vector_store %arg9[%c0_6, %c0_7], %31 {strides = array<i32>} : memref<64x128xf32, #tpu.memory_space<vmem>>, vector<64x128xf32>,
    %c0_8 = arith.constant 0 : index
    %c0_9 = arith.constant 0 : index
    %33 = vector.load %arg4[%c0_8, %c0_9] : memref<32x128xf32, #tpu.memory_space<vmem>>, vector<32x128xf32>
    %c0_10 = arith.constant 0 : index
    %c0_11 = arith.constant 0 : index
    %34 = vector.load %arg11[%c0_10, %c0_11] : memref<8x32xf32, #tpu.memory_space<vmem>>, vector<8x32xf32>
    %c0_12 = arith.constant 0 : index
    %c0_13 = arith.constant 0 : index
    %35 = vector.load %arg12[%c0_12, %c0_13] : memref<8x32xf32, #tpu.memory_space<vmem>>, vector<8x32xf32>
    %c0_i32_14 = arith.constant 0 : i32
    %c8_i32 = arith.constant 8 : i32
    %36 = arith.muli %c0_i32_14, %c8_i32 : i32
    %37 = tpu.assume_multiple %36, 8 : i32
    %38 = arith.index_cast %37 : i32 to index
    %c0_15 = arith.constant 0 : index
    %39 = vector.load %arg9[%38, %c0_15] : memref<64x128xf32, #tpu.memory_space<vmem>>, vector<8x128xf32>
    %cst = arith.constant dense<0.000000e+00> : vector<8x128xf32>
    %40 = tpu.matmul %34, %33, %cst {dimension_numbers = #tpu.dot_dimension_numbers<[1], [0], [0], [1], [0, 0, 1, 1], [], []>} : vector<8x32xf32>, vector<32x128xf32>, vector<8x128xf32> -> vector<8x128xf32>
    %41 = arith.addf %39, %40 : vector<8x128xf32>
    %42 = vector.extract_strided_slice %41 {offsets = [0, 0], sizes = [8, 32], strides = [1, 1]} : vector<8x128xf32> to vector<8x32xf32>
    %43 = arith.negf %42 : vector<8x32xf32>
    %44 = math.exp %43 : vector<8x32xf32>
    %cst_16 = arith.constant 1.000000e+00 : f32
    %45 = vector.broadcast %cst_16 : f32 to vector<8x32xf32>
    %46 = arith.addf %45, %44 : vector<8x32xf32>
    %47 = arith.divf %45, %46 : vector<8x32xf32>
    %48 = vector.extract_strided_slice %41 {offsets = [0, 32], sizes = [8, 32], strides = [1, 1]} : vector<8x128xf32> to vector<8x32xf32>
    %49 = arith.negf %48 : vector<8x32xf32>
    %50 = math.exp %49 : vector<8x32xf32>
    %cst_17 = arith.constant 1.000000e+00 : f32
    %51 = vector.broadcast %cst_17 : f32 to vector<8x32xf32>
    %52 = arith.addf %51, %50 : vector<8x32xf32>
    %53 = arith.divf %51, %52 : vector<8x32xf32>
    %54 = vector.extract_strided_slice %41 {offsets = [0, 64], sizes = [8, 32], strides = [1, 1]} : vector<8x128xf32> to vector<8x32xf32>
    %55 = math.tanh %54 : vector<8x32xf32>
    %56 = vector.extract_strided_slice %41 {offsets = [0, 96], sizes = [8, 32], strides = [1, 1]} : vector<8x128xf32> to vector<8x32xf32>
    %57 = arith.negf %56 : vector<8x32xf32>
    %58 = math.exp %57 : vector<8x32xf32>
    %cst_18 = arith.constant 1.000000e+00 : f32
    %59 = vector.broadcast %cst_18 : f32 to vector<8x32xf32>
    %60 = arith.addf %59, %58 : vector<8x32xf32>
    %61 = arith.divf %59, %60 : vector<8x32xf32>
    %62 = arith.mulf %53, %35 : vector<8x32xf32>
    %63 = arith.mulf %47, %55 : vector<8x32xf32>
    %64 = arith.addf %62, %63 : vector<8x32xf32>
    %65 = math.tanh %64 : vector<8x32xf32>
    %66 = arith.mulf %61, %65 : vector<8x32xf32>
    %67 = arith.index_cast %37 : i32 to index
    %c0_19 = arith.constant 0 : index
    %68 = vector.load %arg10[%67, %c0_19] : memref<64x32xf32, #tpu.memory_space<vmem>>, vector<8x32xf32>
    tpu.vector_store %arg10[%67, %c0_19], %66 {strides = array<i32>} : memref<64x32xf32, #tpu.memory_space<vmem>>, vector<8x32xf32>,
    %c1_i32 = arith.constant 1 : i32
    %c8_i32_20 = arith.constant 8 : i32
    %69 = arith.muli %c1_i32, %c8_i32_20 : i32
    %70 = tpu.assume_multiple %69, 8 : i32
    %71 = arith.index_cast %70 : i32 to index
    %c0_21 = arith.constant 0 : index
    %72 = vector.load %arg9[%71, %c0_21] : memref<64x128xf32, #tpu.memory_space<vmem>>, vector<8x128xf32>
    %cst_22 = arith.constant dense<0.000000e+00> : vector<8x128xf32>
    %73 = tpu.matmul %66, %33, %cst_22 {dimension_numbers = #tpu.dot_dimension_numbers<[1], [0], [0], [1], [0, 0, 1, 1], [], []>} : vector<8x32xf32>, vector<32x128xf32>, vector<8x128xf32> -> vector<8x128xf32>
    %74 = arith.addf %72, %73 : vector<8x128xf32>
    %75 = vector.extract_strided_slice %74 {offsets = [0, 0], sizes = [8, 32], strides = [1, 1]} : vector<8x128xf32> to vector<8x32xf32>
    %76 = arith.negf %75 : vector<8x32xf32>
    %77 = math.exp %76 : vector<8x32xf32>
    %cst_23 = arith.constant 1.000000e+00 : f32
    %78 = vector.broadcast %cst_23 : f32 to vector<8x32xf32>
    %79 = arith.addf %78, %77 : vector<8x32xf32>
    %80 = arith.divf %78, %79 : vector<8x32xf32>
    %81 = vector.extract_strided_slice %74 {offsets = [0, 32], sizes = [8, 32], strides = [1, 1]} : vector<8x128xf32> to vector<8x32xf32>
    %82 = arith.negf %81 : vector<8x32xf32>
    %83 = math.exp %82 : vector<8x32xf32>
    %cst_24 = arith.constant 1.000000e+00 : f32
    %84 = vector.broadcast %cst_24 : f32 to vector<8x32xf32>
    %85 = arith.addf %84, %83 : vector<8x32xf32>
    %86 = arith.divf %84, %85 : vector<8x32xf32>
    %87 = vector.extract_strided_slice %74 {offsets = [0, 64], sizes = [8, 32], strides = [1, 1]} : vector<8x128xf32> to vector<8x32xf32>
    %88 = math.tanh %87 : vector<8x32xf32>
    %89 = vector.extract_strided_slice %74 {offsets = [0, 96], sizes = [8, 32], strides = [1, 1]} : vector<8x128xf32> to vector<8x32xf32>
    %90 = arith.negf %89 : vector<8x32xf32>
    %91 = math.exp %90 : vector<8x32xf32>
    %cst_25 = arith.constant 1.000000e+00 : f32
    %92 = vector.broadcast %cst_25 : f32 to vector<8x32xf32>
    %93 = arith.addf %92, %91 : vector<8x32xf32>
    %94 = arith.divf %92, %93 : vector<8x32xf32>
    %95 = arith.mulf %86, %64 : vector<8x32xf32>
    %96 = arith.mulf %80, %88 : vector<8x32xf32>
    %97 = arith.addf %95, %96 : vector<8x32xf32>
    %98 = math.tanh %97 : vector<8x32xf32>
    %99 = arith.mulf %94, %98 : vector<8x32xf32>
    %100 = arith.index_cast %70 : i32 to index
    %c0_26 = arith.constant 0 : index
    %101 = vector.load %arg10[%100, %c0_26] : memref<64x32xf32, #tpu.memory_space<vmem>>, vector<8x32xf32>
    tpu.vector_store %arg10[%100, %c0_26], %99 {strides = array<i32>} : memref<64x32xf32, #tpu.memory_space<vmem>>, vector<8x32xf32>,
    %c2_i32 = arith.constant 2 : i32
    %c8_i32_27 = arith.constant 8 : i32
    %102 = arith.muli %c2_i32, %c8_i32_27 : i32
    %103 = tpu.assume_multiple %102, 8 : i32
    %104 = arith.index_cast %103 : i32 to index
    %c0_28 = arith.constant 0 : index
    %105 = vector.load %arg9[%104, %c0_28] : memref<64x128xf32, #tpu.memory_space<vmem>>, vector<8x128xf32>
    %cst_29 = arith.constant dense<0.000000e+00> : vector<8x128xf32>
    %106 = tpu.matmul %99, %33, %cst_29 {dimension_numbers = #tpu.dot_dimension_numbers<[1], [0], [0], [1], [0, 0, 1, 1], [], []>} : vector<8x32xf32>, vector<32x128xf32>, vector<8x128xf32> -> vector<8x128xf32>
    %107 = arith.addf %105, %106 : vector<8x128xf32>
    %108 = vector.extract_strided_slice %107 {offsets = [0, 0], sizes = [8, 32], strides = [1, 1]} : vector<8x128xf32> to vector<8x32xf32>
    %109 = arith.negf %108 : vector<8x32xf32>
    %110 = math.exp %109 : vector<8x32xf32>
    %cst_30 = arith.constant 1.000000e+00 : f32
    %111 = vector.broadcast %cst_30 : f32 to vector<8x32xf32>
    %112 = arith.addf %111, %110 : vector<8x32xf32>
    %113 = arith.divf %111, %112 : vector<8x32xf32>
    %114 = vector.extract_strided_slice %107 {offsets = [0, 32], sizes = [8, 32], strides = [1, 1]} : vector<8x128xf32> to vector<8x32xf32>
    %115 = arith.negf %114 : vector<8x32xf32>
    %116 = math.exp %115 : vector<8x32xf32>
    %cst_31 = arith.constant 1.000000e+00 : f32
    %117 = vector.broadcast %cst_31 : f32 to vector<8x32xf32>
    %118 = arith.addf %117, %116 : vector<8x32xf32>
    %119 = arith.divf %117, %118 : vector<8x32xf32>
    %120 = vector.extract_strided_slice %107 {offsets = [0, 64], sizes = [8, 32], strides = [1, 1]} : vector<8x128xf32> to vector<8x32xf32>
    %121 = math.tanh %120 : vector<8x32xf32>
    %122 = vector.extract_strided_slice %107 {offsets = [0, 96], sizes = [8, 32], strides = [1, 1]} : vector<8x128xf32> to vector<8x32xf32>
    %123 = arith.negf %122 : vector<8x32xf32>
    %124 = math.exp %123 : vector<8x32xf32>
    %cst_32 = arith.constant 1.000000e+00 : f32
    %125 = vector.broadcast %cst_32 : f32 to vector<8x32xf32>
    %126 = arith.addf %125, %124 : vector<8x32xf32>
    %127 = arith.divf %125, %126 : vector<8x32xf32>
    %128 = arith.mulf %119, %97 : vector<8x32xf32>
    %129 = arith.mulf %113, %121 : vector<8x32xf32>
    %130 = arith.addf %128, %129 : vector<8x32xf32>
    %131 = math.tanh %130 : vector<8x32xf32>
    %132 = arith.mulf %127, %131 : vector<8x32xf32>
    %133 = arith.index_cast %103 : i32 to index
    %c0_33 = arith.constant 0 : index
    %134 = vector.load %arg10[%133, %c0_33] : memref<64x32xf32, #tpu.memory_space<vmem>>, vector<8x32xf32>
    tpu.vector_store %arg10[%133, %c0_33], %132 {strides = array<i32>} : memref<64x32xf32, #tpu.memory_space<vmem>>, vector<8x32xf32>,
    %c3_i32 = arith.constant 3 : i32
    %c8_i32_34 = arith.constant 8 : i32
    %135 = arith.muli %c3_i32, %c8_i32_34 : i32
    %136 = tpu.assume_multiple %135, 8 : i32
    %137 = arith.index_cast %136 : i32 to index
    %c0_35 = arith.constant 0 : index
    %138 = vector.load %arg9[%137, %c0_35] : memref<64x128xf32, #tpu.memory_space<vmem>>, vector<8x128xf32>
    %cst_36 = arith.constant dense<0.000000e+00> : vector<8x128xf32>
    %139 = tpu.matmul %132, %33, %cst_36 {dimension_numbers = #tpu.dot_dimension_numbers<[1], [0], [0], [1], [0, 0, 1, 1], [], []>} : vector<8x32xf32>, vector<32x128xf32>, vector<8x128xf32> -> vector<8x128xf32>
    %140 = arith.addf %138, %139 : vector<8x128xf32>
    %141 = vector.extract_strided_slice %140 {offsets = [0, 0], sizes = [8, 32], strides = [1, 1]} : vector<8x128xf32> to vector<8x32xf32>
    %142 = arith.negf %141 : vector<8x32xf32>
    %143 = math.exp %142 : vector<8x32xf32>
    %cst_37 = arith.constant 1.000000e+00 : f32
    %144 = vector.broadcast %cst_37 : f32 to vector<8x32xf32>
    %145 = arith.addf %144, %143 : vector<8x32xf32>
    %146 = arith.divf %144, %145 : vector<8x32xf32>
    %147 = vector.extract_strided_slice %140 {offsets = [0, 32], sizes = [8, 32], strides = [1, 1]} : vector<8x128xf32> to vector<8x32xf32>
    %148 = arith.negf %147 : vector<8x32xf32>
    %149 = math.exp %148 : vector<8x32xf32>
    %cst_38 = arith.constant 1.000000e+00 : f32
    %150 = vector.broadcast %cst_38 : f32 to vector<8x32xf32>
    %151 = arith.addf %150, %149 : vector<8x32xf32>
    %152 = arith.divf %150, %151 : vector<8x32xf32>
    %153 = vector.extract_strided_slice %140 {offsets = [0, 64], sizes = [8, 32], strides = [1, 1]} : vector<8x128xf32> to vector<8x32xf32>
    %154 = math.tanh %153 : vector<8x32xf32>
    %155 = vector.extract_strided_slice %140 {offsets = [0, 96], sizes = [8, 32], strides = [1, 1]} : vector<8x128xf32> to vector<8x32xf32>
    %156 = arith.negf %155 : vector<8x32xf32>
    %157 = math.exp %156 : vector<8x32xf32>
    %cst_39 = arith.constant 1.000000e+00 : f32
    %158 = vector.broadcast %cst_39 : f32 to vector<8x32xf32>
    %159 = arith.addf %158, %157 : vector<8x32xf32>
    %160 = arith.divf %158, %159 : vector<8x32xf32>
    %161 = arith.mulf %152, %130 : vector<8x32xf32>
    %162 = arith.mulf %146, %154 : vector<8x32xf32>
    %163 = arith.addf %161, %162 : vector<8x32xf32>
    %164 = math.tanh %163 : vector<8x32xf32>
    %165 = arith.mulf %160, %164 : vector<8x32xf32>
    %166 = arith.index_cast %136 : i32 to index
    %c0_40 = arith.constant 0 : index
    %167 = vector.load %arg10[%166, %c0_40] : memref<64x32xf32, #tpu.memory_space<vmem>>, vector<8x32xf32>
    tpu.vector_store %arg10[%166, %c0_40], %165 {strides = array<i32>} : memref<64x32xf32, #tpu.memory_space<vmem>>, vector<8x32xf32>,
    %c4_i32 = arith.constant 4 : i32
    %c8_i32_41 = arith.constant 8 : i32
    %168 = arith.muli %c4_i32, %c8_i32_41 : i32
    %169 = tpu.assume_multiple %168, 8 : i32
    %170 = arith.index_cast %169 : i32 to index
    %c0_42 = arith.constant 0 : index
    %171 = vector.load %arg9[%170, %c0_42] : memref<64x128xf32, #tpu.memory_space<vmem>>, vector<8x128xf32>
    %cst_43 = arith.constant dense<0.000000e+00> : vector<8x128xf32>
    %172 = tpu.matmul %165, %33, %cst_43 {dimension_numbers = #tpu.dot_dimension_numbers<[1], [0], [0], [1], [0, 0, 1, 1], [], []>} : vector<8x32xf32>, vector<32x128xf32>, vector<8x128xf32> -> vector<8x128xf32>
    %173 = arith.addf %171, %172 : vector<8x128xf32>
    %174 = vector.extract_strided_slice %173 {offsets = [0, 0], sizes = [8, 32], strides = [1, 1]} : vector<8x128xf32> to vector<8x32xf32>
    %175 = arith.negf %174 : vector<8x32xf32>
    %176 = math.exp %175 : vector<8x32xf32>
    %cst_44 = arith.constant 1.000000e+00 : f32
    %177 = vector.broadcast %cst_44 : f32 to vector<8x32xf32>
    %178 = arith.addf %177, %176 : vector<8x32xf32>
    %179 = arith.divf %177, %178 : vector<8x32xf32>
    %180 = vector.extract_strided_slice %173 {offsets = [0, 32], sizes = [8, 32], strides = [1, 1]} : vector<8x128xf32> to vector<8x32xf32>
    %181 = arith.negf %180 : vector<8x32xf32>
    %182 = math.exp %181 : vector<8x32xf32>
    %cst_45 = arith.constant 1.000000e+00 : f32
    %183 = vector.broadcast %cst_45 : f32 to vector<8x32xf32>
    %184 = arith.addf %183, %182 : vector<8x32xf32>
    %185 = arith.divf %183, %184 : vector<8x32xf32>
    %186 = vector.extract_strided_slice %173 {offsets = [0, 64], sizes = [8, 32], strides = [1, 1]} : vector<8x128xf32> to vector<8x32xf32>
    %187 = math.tanh %186 : vector<8x32xf32>
    %188 = vector.extract_strided_slice %173 {offsets = [0, 96], sizes = [8, 32], strides = [1, 1]} : vector<8x128xf32> to vector<8x32xf32>
    %189 = arith.negf %188 : vector<8x32xf32>
    %190 = math.exp %189 : vector<8x32xf32>
    %cst_46 = arith.constant 1.000000e+00 : f32
    %191 = vector.broadcast %cst_46 : f32 to vector<8x32xf32>
    %192 = arith.addf %191, %190 : vector<8x32xf32>
    %193 = arith.divf %191, %192 : vector<8x32xf32>
    %194 = arith.mulf %185, %163 : vector<8x32xf32>
    %195 = arith.mulf %179, %187 : vector<8x32xf32>
    %196 = arith.addf %194, %195 : vector<8x32xf32>
    %197 = math.tanh %196 : vector<8x32xf32>
    %198 = arith.mulf %193, %197 : vector<8x32xf32>
    %199 = arith.index_cast %169 : i32 to index
    %c0_47 = arith.constant 0 : index
    %200 = vector.load %arg10[%199, %c0_47] : memref<64x32xf32, #tpu.memory_space<vmem>>, vector<8x32xf32>
    tpu.vector_store %arg10[%199, %c0_47], %198 {strides = array<i32>} : memref<64x32xf32, #tpu.memory_space<vmem>>, vector<8x32xf32>,
    %c5_i32 = arith.constant 5 : i32
    %c8_i32_48 = arith.constant 8 : i32
    %201 = arith.muli %c5_i32, %c8_i32_48 : i32
    %202 = tpu.assume_multiple %201, 8 : i32
    %203 = arith.index_cast %202 : i32 to index
    %c0_49 = arith.constant 0 : index
    %204 = vector.load %arg9[%203, %c0_49] : memref<64x128xf32, #tpu.memory_space<vmem>>, vector<8x128xf32>
    %cst_50 = arith.constant dense<0.000000e+00> : vector<8x128xf32>
    %205 = tpu.matmul %198, %33, %cst_50 {dimension_numbers = #tpu.dot_dimension_numbers<[1], [0], [0], [1], [0, 0, 1, 1], [], []>} : vector<8x32xf32>, vector<32x128xf32>, vector<8x128xf32> -> vector<8x128xf32>
    %206 = arith.addf %204, %205 : vector<8x128xf32>
    %207 = vector.extract_strided_slice %206 {offsets = [0, 0], sizes = [8, 32], strides = [1, 1]} : vector<8x128xf32> to vector<8x32xf32>
    %208 = arith.negf %207 : vector<8x32xf32>
    %209 = math.exp %208 : vector<8x32xf32>
    %cst_51 = arith.constant 1.000000e+00 : f32
    %210 = vector.broadcast %cst_51 : f32 to vector<8x32xf32>
    %211 = arith.addf %210, %209 : vector<8x32xf32>
    %212 = arith.divf %210, %211 : vector<8x32xf32>
    %213 = vector.extract_strided_slice %206 {offsets = [0, 32], sizes = [8, 32], strides = [1, 1]} : vector<8x128xf32> to vector<8x32xf32>
    %214 = arith.negf %213 : vector<8x32xf32>
    %215 = math.exp %214 : vector<8x32xf32>
    %cst_52 = arith.constant 1.000000e+00 : f32
    %216 = vector.broadcast %cst_52 : f32 to vector<8x32xf32>
    %217 = arith.addf %216, %215 : vector<8x32xf32>
    %218 = arith.divf %216, %217 : vector<8x32xf32>
    %219 = vector.extract_strided_slice %206 {offsets = [0, 64], sizes = [8, 32], strides = [1, 1]} : vector<8x128xf32> to vector<8x32xf32>
    %220 = math.tanh %219 : vector<8x32xf32>
    %221 = vector.extract_strided_slice %206 {offsets = [0, 96], sizes = [8, 32], strides = [1, 1]} : vector<8x128xf32> to vector<8x32xf32>
    %222 = arith.negf %221 : vector<8x32xf32>
    %223 = math.exp %222 : vector<8x32xf32>
    %cst_53 = arith.constant 1.000000e+00 : f32
    %224 = vector.broadcast %cst_53 : f32 to vector<8x32xf32>
    %225 = arith.addf %224, %223 : vector<8x32xf32>
    %226 = arith.divf %224, %225 : vector<8x32xf32>
    %227 = arith.mulf %218, %196 : vector<8x32xf32>
    %228 = arith.mulf %212, %220 : vector<8x32xf32>
    %229 = arith.addf %227, %228 : vector<8x32xf32>
    %230 = math.tanh %229 : vector<8x32xf32>
    %231 = arith.mulf %226, %230 : vector<8x32xf32>
    %232 = arith.index_cast %202 : i32 to index
    %c0_54 = arith.constant 0 : index
    %233 = vector.load %arg10[%232, %c0_54] : memref<64x32xf32, #tpu.memory_space<vmem>>, vector<8x32xf32>
    tpu.vector_store %arg10[%232, %c0_54], %231 {strides = array<i32>} : memref<64x32xf32, #tpu.memory_space<vmem>>, vector<8x32xf32>,
    %c6_i32 = arith.constant 6 : i32
    %c8_i32_55 = arith.constant 8 : i32
    %234 = arith.muli %c6_i32, %c8_i32_55 : i32
    %235 = tpu.assume_multiple %234, 8 : i32
    %236 = arith.index_cast %235 : i32 to index
    %c0_56 = arith.constant 0 : index
    %237 = vector.load %arg9[%236, %c0_56] : memref<64x128xf32, #tpu.memory_space<vmem>>, vector<8x128xf32>
    %cst_57 = arith.constant dense<0.000000e+00> : vector<8x128xf32>
    %238 = tpu.matmul %231, %33, %cst_57 {dimension_numbers = #tpu.dot_dimension_numbers<[1], [0], [0], [1], [0, 0, 1, 1], [], []>} : vector<8x32xf32>, vector<32x128xf32>, vector<8x128xf32> -> vector<8x128xf32>
    %239 = arith.addf %237, %238 : vector<8x128xf32>
    %240 = vector.extract_strided_slice %239 {offsets = [0, 0], sizes = [8, 32], strides = [1, 1]} : vector<8x128xf32> to vector<8x32xf32>
    %241 = arith.negf %240 : vector<8x32xf32>
    %242 = math.exp %241 : vector<8x32xf32>
    %cst_58 = arith.constant 1.000000e+00 : f32
    %243 = vector.broadcast %cst_58 : f32 to vector<8x32xf32>
    %244 = arith.addf %243, %242 : vector<8x32xf32>
    %245 = arith.divf %243, %244 : vector<8x32xf32>
    %246 = vector.extract_strided_slice %239 {offsets = [0, 32], sizes = [8, 32], strides = [1, 1]} : vector<8x128xf32> to vector<8x32xf32>
    %247 = arith.negf %246 : vector<8x32xf32>
    %248 = math.exp %247 : vector<8x32xf32>
    %cst_59 = arith.constant 1.000000e+00 : f32
    %249 = vector.broadcast %cst_59 : f32 to vector<8x32xf32>
    %250 = arith.addf %249, %248 : vector<8x32xf32>
    %251 = arith.divf %249, %250 : vector<8x32xf32>
    %252 = vector.extract_strided_slice %239 {offsets = [0, 64], sizes = [8, 32], strides = [1, 1]} : vector<8x128xf32> to vector<8x32xf32>
    %253 = math.tanh %252 : vector<8x32xf32>
    %254 = vector.extract_strided_slice %239 {offsets = [0, 96], sizes = [8, 32], strides = [1, 1]} : vector<8x128xf32> to vector<8x32xf32>
    %255 = arith.negf %254 : vector<8x32xf32>
    %256 = math.exp %255 : vector<8x32xf32>
    %cst_60 = arith.constant 1.000000e+00 : f32
    %257 = vector.broadcast %cst_60 : f32 to vector<8x32xf32>
    %258 = arith.addf %257, %256 : vector<8x32xf32>
    %259 = arith.divf %257, %258 : vector<8x32xf32>
    %260 = arith.mulf %251, %229 : vector<8x32xf32>
    %261 = arith.mulf %245, %253 : vector<8x32xf32>
    %262 = arith.addf %260, %261 : vector<8x32xf32>
    %263 = math.tanh %262 : vector<8x32xf32>
    %264 = arith.mulf %259, %263 : vector<8x32xf32>
    %265 = arith.index_cast %235 : i32 to index
    %c0_61 = arith.constant 0 : index
    %266 = vector.load %arg10[%265, %c0_61] : memref<64x32xf32, #tpu.memory_space<vmem>>, vector<8x32xf32>
    tpu.vector_store %arg10[%265, %c0_61], %264 {strides = array<i32>} : memref<64x32xf32, #tpu.memory_space<vmem>>, vector<8x32xf32>,
    %c7_i32 = arith.constant 7 : i32
    %c8_i32_62 = arith.constant 8 : i32
    %267 = arith.muli %c7_i32, %c8_i32_62 : i32
    %268 = tpu.assume_multiple %267, 8 : i32
    %269 = arith.index_cast %268 : i32 to index
    %c0_63 = arith.constant 0 : index
    %270 = vector.load %arg9[%269, %c0_63] : memref<64x128xf32, #tpu.memory_space<vmem>>, vector<8x128xf32>
    %cst_64 = arith.constant dense<0.000000e+00> : vector<8x128xf32>
    %271 = tpu.matmul %264, %33, %cst_64 {dimension_numbers = #tpu.dot_dimension_numbers<[1], [0], [0], [1], [0, 0, 1, 1], [], []>} : vector<8x32xf32>, vector<32x128xf32>, vector<8x128xf32> -> vector<8x128xf32>
    %272 = arith.addf %270, %271 : vector<8x128xf32>
    %273 = vector.extract_strided_slice %272 {offsets = [0, 0], sizes = [8, 32], strides = [1, 1]} : vector<8x128xf32> to vector<8x32xf32>
    %274 = arith.negf %273 : vector<8x32xf32>
    %275 = math.exp %274 : vector<8x32xf32>
    %cst_65 = arith.constant 1.000000e+00 : f32
    %276 = vector.broadcast %cst_65 : f32 to vector<8x32xf32>
    %277 = arith.addf %276, %275 : vector<8x32xf32>
    %278 = arith.divf %276, %277 : vector<8x32xf32>
    %279 = vector.extract_strided_slice %272 {offsets = [0, 32], sizes = [8, 32], strides = [1, 1]} : vector<8x128xf32> to vector<8x32xf32>
    %280 = arith.negf %279 : vector<8x32xf32>
    %281 = math.exp %280 : vector<8x32xf32>
    %cst_66 = arith.constant 1.000000e+00 : f32
    %282 = vector.broadcast %cst_66 : f32 to vector<8x32xf32>
    %283 = arith.addf %282, %281 : vector<8x32xf32>
    %284 = arith.divf %282, %283 : vector<8x32xf32>
    %285 = vector.extract_strided_slice %272 {offsets = [0, 64], sizes = [8, 32], strides = [1, 1]} : vector<8x128xf32> to vector<8x32xf32>
    %286 = math.tanh %285 : vector<8x32xf32>
    %287 = vector.extract_strided_slice %272 {offsets = [0, 96], sizes = [8, 32], strides = [1, 1]} : vector<8x128xf32> to vector<8x32xf32>
    %288 = arith.negf %287 : vector<8x32xf32>
    %289 = math.exp %288 : vector<8x32xf32>
    %cst_67 = arith.constant 1.000000e+00 : f32
    %290 = vector.broadcast %cst_67 : f32 to vector<8x32xf32>
    %291 = arith.addf %290, %289 : vector<8x32xf32>
    %292 = arith.divf %290, %291 : vector<8x32xf32>
    %293 = arith.mulf %284, %262 : vector<8x32xf32>
    %294 = arith.mulf %278, %286 : vector<8x32xf32>
    %295 = arith.addf %293, %294 : vector<8x32xf32>
    %296 = math.tanh %295 : vector<8x32xf32>
    %297 = arith.mulf %292, %296 : vector<8x32xf32>
    %298 = arith.index_cast %268 : i32 to index
    %c0_68 = arith.constant 0 : index
    %299 = vector.load %arg10[%298, %c0_68] : memref<64x32xf32, #tpu.memory_space<vmem>>, vector<8x32xf32>
    tpu.vector_store %arg10[%298, %c0_68], %297 {strides = array<i32>} : memref<64x32xf32, #tpu.memory_space<vmem>>, vector<8x32xf32>,
    %c8_i32_69 = arith.constant 8 : i32
    %c0_70 = arith.constant 0 : index
    %c0_71 = arith.constant 0 : index
    %300 = vector.load %arg11[%c0_70, %c0_71] : memref<8x32xf32, #tpu.memory_space<vmem>>, vector<8x32xf32>
    tpu.vector_store %arg11[%c0_70, %c0_71], %297 {strides = array<i32>} : memref<8x32xf32, #tpu.memory_space<vmem>>, vector<8x32xf32>,
    %c0_72 = arith.constant 0 : index
    %c0_73 = arith.constant 0 : index
    %301 = vector.load %arg12[%c0_72, %c0_73] : memref<8x32xf32, #tpu.memory_space<vmem>>, vector<8x32xf32>
    tpu.vector_store %arg12[%c0_72, %c0_73], %295 {strides = array<i32>} : memref<8x32xf32, #tpu.memory_space<vmem>>, vector<8x32xf32>,
    %c0_74 = arith.constant 0 : index
    %c0_75 = arith.constant 0 : index
    %302 = vector.load %arg10[%c0_74, %c0_75] : memref<64x32xf32, #tpu.memory_space<vmem>>, vector<64x32xf32>
    %cst_76 = arith.constant 0.000000e+00 : f32
    %303 = vector.broadcast %cst_76 : f32 to vector<64x32xf32>
    %304 = arith.cmpf ogt, %302, %303 : vector<64x32xf32>
    %cst_77 = arith.constant 0.00999999977 : f32
    %305 = vector.broadcast %cst_77 : f32 to vector<64x32xf32>
    %306 = arith.mulf %305, %302 : vector<64x32xf32>
    %307 = arith.select %304, %302, %306 : vector<64x32xi1>, vector<64x32xf32>
    %c0_78 = arith.constant 0 : index
    %c0_79 = arith.constant 0 : index
    %308 = vector.load %arg6[%c0_78, %c0_79] : memref<1x32xf32, #tpu.memory_space<vmem>>, vector<1x32xf32>
    %cst_80 = arith.constant dense<0.000000e+00> : vector<1x64xf32>
    %309 = tpu.matmul %308, %307, %cst_80 {dimension_numbers = #tpu.dot_dimension_numbers<[1], [1], [0], [0], [0, 0, 1, 0], [], []>} : vector<1x32xf32>, vector<64x32xf32>, vector<1x64xf32> -> vector<1x64xf32>
    %c0_81 = arith.constant 0 : index
    %c0_82 = arith.constant 0 : index
    %310 = vector.load %arg7[%c0_81, %c0_82] : memref<1x1xf32, #tpu.memory_space<vmem>>, vector<1x1xf32>
    %311 = vector.broadcast %310 : vector<1x1xf32> to vector<1x64xf32>
    %312 = arith.addf %309, %311 : vector<1x64xf32>
    %313 = arith.negf %312 : vector<1x64xf32>
    %314 = math.exp %313 : vector<1x64xf32>
    %cst_83 = arith.constant 1.000000e+00 : f32
    %315 = vector.broadcast %cst_83 : f32 to vector<1x64xf32>
    %316 = arith.addf %315, %314 : vector<1x64xf32>
    %317 = arith.divf %315, %316 : vector<1x64xf32>
    %c0_84 = arith.constant 0 : index
    %c0_85 = arith.constant 0 : index
    %c0_86 = arith.constant 0 : index
    %318 = vector.load %arg8[%c0_84, %c0_85, %c0_86] : memref<1x1x64xf32, #tpu.memory_space<vmem>>, vector<1x1x64xf32>
    %319 = vector.shape_cast %318 : vector<1x1x64xf32> to vector<1x64xf32>
    %320 = vector.shape_cast %317 : vector<1x64xf32> to vector<1x1x64xf32>
    tpu.vector_store %arg8[%c0_84, %c0_85, %c0_86], %320 {strides = array<i32>} : memref<1x1x64xf32, #tpu.memory_space<vmem>>, vector<1x1x64xf32>,
    return
  }
  func.func @transform_0(%arg0: i32, %arg1: i32) -> (i32, i32) {
    %c1_i32 = arith.constant 1 : i32
    %0 = arith.muli %arg0, %c1_i32 : i32
    %1 = arith.addi %0, %arg1 : i32
    %c0_i32 = arith.constant 0 : i32
    %c0_i32_0 = arith.constant 0 : i32
    return %1, %c0_i32 : i32, i32
  }
  func.func @transform_1(%arg0: i32, %arg1: i32) -> (i32, i32) {
    %c0_i32 = arith.constant 0 : i32
    %c0_i32_0 = arith.constant 0 : i32
    %c0_i32_1 = arith.constant 0 : i32
    return %c0_i32, %c0_i32_0 : i32, i32
  }
  func.func @transform_2(%arg0: i32, %arg1: i32) -> (i32, i32) {
    %c0_i32 = arith.constant 0 : i32
    %c0_i32_0 = arith.constant 0 : i32
    %c0_i32_1 = arith.constant 0 : i32
    return %c0_i32, %c0_i32_0 : i32, i32
  }
  func.func @transform_3(%arg0: i32, %arg1: i32) -> (i32, i32) {
    %c0_i32 = arith.constant 0 : i32
    %c0_i32_0 = arith.constant 0 : i32
    %c0_i32_1 = arith.constant 0 : i32
    return %c0_i32, %c0_i32_0 : i32, i32
  }
  func.func @transform_4(%arg0: i32, %arg1: i32) -> (i32, i32) {
    %c0_i32 = arith.constant 0 : i32
    %c0_i32_0 = arith.constant 0 : i32
    %c0_i32_1 = arith.constant 0 : i32
    return %c0_i32, %c0_i32_0 : i32, i32
  }
  func.func @transform_5(%arg0: i32, %arg1: i32) -> (i32, i32) {
    %c0_i32 = arith.constant 0 : i32
    %c0_i32_0 = arith.constant 0 : i32
    %c0_i32_1 = arith.constant 0 : i32
    return %c0_i32, %c0_i32_0 : i32, i32
  }
  func.func @transform_6(%arg0: i32, %arg1: i32) -> (i32, i32, i32) {
    %c0_i32 = arith.constant 0 : i32
    %c0_i32_0 = arith.constant 0 : i32
    return %arg0, %c0_i32, %arg1 : i32, i32, i32
  }
}

</mosaic_0001>

<bundles_post_ra>
// kernel: tpu_custom_call.1
= control target key start
LH: loop header
LB: loop body
LE: loop exit
PB: predicated region body
PF: predicated region fallthrough
CT: control target
= control target key end

     0   :  { %s2033_s0 = inlined_call_operand.vmem [shape: f32[64,4], index: 0, kind: input, shape index: {}]   ;;  %s2034_s1 = inlined_call_operand.vmem [shape: f32[4,128], index: 1, kind: input, shape index: {}]   ;;  %s2035_s2 = inlined_call_operand.vmem [shape: f32[32,128], index: 2, kind: input, shape index: {}]   ;;  %s2036_s3 = inlined_call_operand.vmem [shape: f32[1,128], index: 3, kind: input, shape index: {}]   ;;  %s2037_s4 = inlined_call_operand.vmem [shape: f32[1,32], index: 4, kind: input, shape index: {}]   ;;  %s2038_s5 = inlined_call_operand.<no memory space> [shape: f32[1,1], index: 5, kind: input, shape index: {}]   ;;  %s2039_s6 = inlined_call_operand.hbm [shape: f32[1,1,64], index: 6, kind: output, shape index: {}]  }
   0x1   :  { %v11_v0 = vstv %s2038_s5 }
   0x2   :  { %12 = vst [vmem:[#allocation6] sm:$0x1] %v11_v0 }
   0x3   :  { %v295_v1 = vld [vmem:[%s2035_s2] sm:$0xff]  ;;  %v296_v2 = vld [vmem:[%s2035_s2 + $0x8] sm:$0xff]  ;;  %v297_v3 = vld [vmem:[%s2035_s2 + $0x10] sm:$0xff]  ;;  %v1702_v4 = vmov 0.0|0.0   ;;  %vm1703_vm0 = vmmov 0   ;;  %v1704_v7 = vmov 0.0  }
   0x4   :  { %1502 = vmatprep.subr.bf16.mxu1 %v1702_v4  ;;  %v1761_v5 = vpack.c.bf16 %v296_v2, %v295_v1  ;;  %v298_v6 = vld [vmem:[%s2035_s2 + $0x18] sm:$0xff]  ;;  %1403 = vmatprep.mubr.msk.f32.mxu1 %vm1703_vm0, %v1704_v7  ;;  %vm52_vm1 = vcmask 261120   ;;  %v55_v8 = vld [vmem:[%s2033_s0] sm:$0xff]  ;;  %v1705_v9 = vmov 0   ;;  %v1706_v10 = vmov 2  }
   0x5   :  { %53 = vst.msk [vmem:[#allocation4] sm:$0xff] %vm52_vm1, %v1704_v7  ;;  %54 = vst.msk [vmem:[#allocation5] sm:$0xff] %vm52_vm1, %v1704_v7  ;;  %1577 = vset.pattern.permute.xlu0 %v1705_v9  ;;  %1579 = vset.pattern.permute.xlu1 %v1706_v10  ;;  %v1778_v11 = vpack.c.bf16 %v298_v6, %v297_v3 }
   0x6   :  { %1504 = vmatpush3.bf16.msra.mxu1 %v1761_v5  ;;  %73 = vperm.xlu0 %1577, %v55_v8  }
   0x7   :  { %13 = vsyncpa [#allocation8], 0  ;;  %1505 = vmatprep.subr.bf16.mxu1 %v1702_v4  ;;  %184 = vperm.xlu1 %1579, %v55_v8   ;;  %v1707_v12 = vmov 1   ;;  %v1708_v13 = vmov 3   ;;  %s1709_s2 = smov 32   ;;  %v111_v16 = vlaneseq  ;;  %v56_v55 = vld [vmem:[%s2033_s0 + $0x8] sm:$0xff] }
   0x8   :  { %1526 = vmatprep.subr.bf16.mxu0 %v1702_v4  ;;  %1447 = vmatprep.mubr.msk.f32.mxu0 %vm1703_vm0, %v1704_v7  ;;  %v63_v19 = vld [vmem:[%s2034_s1] sm:$0xf]  ;;  %s1710_s1 = smov 64   ;;  %vm1966_vm4 = vmpackc.low %vm52_vm1, %vm52_vm1  ;;  %s1712_s27 = smov [#allocation7]   ;;  %vm1297_vm11 = vcmask 516096  }
   0x9   :  { %1528 = vmatpush3.bf16.msra.mxu0 %v1761_v5  ;;  %v1802_v17 = vshrl.u32 %v111_v16, 7  ;;  %v1820_v26 = vld [vmem:[%s2036_s3] ss:$0 sm:$0xff]  ;;  %s1305_s28 = sshll.u32 %s1712_s27, 4  ;;  %s1306_s28 = int_to_ptr.vmem [resolvable:$true] %s1305_s28 }
   0xa   :  { %1507 = vmatpush3.bf16.msra.mxu1 %v1778_v11  ;;  %1578 = vset.pattern.permute.xlu0 %v1707_v12  ;;  %s1682_s29 = scalar_lea.vmem %s1306_s28, 32  ;;  %p1683_p1 = scmp.lt.s32.totalorder %s1306_s28, %s1306_s28 }
   0xb   :  { %132 = vperm.xlu0 %1578, %v55_v8   ;;  %1580 = vset.pattern.permute.xlu1 %v1708_v13  ;;  %v113_v18 = vsub.s32 0, %v1802_v17  ;;  %v165_v22 = vsub.s32 1, %v1802_v17  ;;  %v217_v24 = vsub.s32 2, %v1802_v17  ;;  %v269_v32 = vsub.s32 3, %v1802_v17 }
   0xc   :  { %v299_v14 = vld [vmem:[#allocation4] sm:$0xff]  ;;  %236 = vperm.xlu1 %1580, %v55_v8   ;;  %v300_v15 = vld [vmem:[#allocation5] sm:$0xff]  ;;  %1508 = vmatprep.subr.bf16.mxu1 %v1702_v4 }
   0xd   :  { %1404 = vmatmul.mubr.msk.f32.vlgmr.msra.gmra.mrb[0].mxu1 %vm52_vm1, %v299_v14  ;;  %1529 = vmatprep.subr.bf16.mxu0 %v1702_v4  ;;  %v1810_v21 = vrot.slane %v63_v19, %v113_v18  ;;  %v1815_v25 = vrot.slane %v63_v19, %v165_v22  ;;  %v1823_v30 = vrot.slane %v63_v19, %v217_v24 }
   0xe   :  { %1510 = vmatpush3.bf16.msra.mxu1 %v1761_v5  ;;  %1414 = vmatprep.mubr.msk.f32.mxu1 %vm1703_vm0, %v1704_v7  ;;  %v1828_v35 = vrot.slane %v63_v19, %v269_v32 }
   0xf   :  { %385 = vrot.lane.b32.xlu0 %v300_v15, %s1709_s2  ;;  %1511 = vmatprep.subr.bf16.mxu1 %v1702_v4 }
  0x10   :  { %1582 = vset.pattern.permute.xlu1 %v1707_v12  ;;  %1581 = vset.pattern.permute.xlu0 %v1705_v9 }
  0x11   :  { %1531 = vmatpush3.bf16.msra.mxu0 %v1778_v11 }
  0x12   :  { %1513 = vmatpush3.bf16.msra.mxu1 %v1778_v11  ;;  %1538 = vmatprep.subr.bf16.mxu0 %v1702_v4 }
  0x13   :  { %1514 = vmatprep.subr.bf16.mxu1 %v1702_v4 }
  0x85   :  { %v74_v20 = vpop.permute.xlu0 %73 }
  0x86   :  { %v115_v23 = vmul.f32 %v1810_v21, %v74_v20  ;;  %v185_v28 = vpop.permute.xlu1 %184 }
  0x87   :  { %v219_v33 = vmul.f32 %v1823_v30, %v185_v28 }
  0x88   :  { %v123_v29 = vadd.f32 %v1820_v26, %v115_v23 }
  0x8a   :  { %v133_v27 = vpop.permute.xlu0 %132 }
  0x8b   :  { %v167_v31 = vmul.f32 %v1815_v25, %v133_v27  ;;  %v237_v36 = vpop.permute.xlu1 %236 }
  0x8c   :  { %v271_v37 = vmul.f32 %v1828_v35, %v237_v36  ;;  %v57_v36 = vld [vmem:[%s2033_s0 + $0x10] sm:$0xff] }
  0x8d   :  { %v175_v34 = vadd.f32 %v167_v31, %v123_v29 }
  0x8e   :  { %v386_v50 = vpop.permute.xlu0 %385 }
  0x8f   :  { %v227_v38 = vadd.f32 %v219_v33, %v175_v34 }
  0x91   :  { %v279_v39 = vadd.f32 %v271_v37, %v227_v38 }
  0xe0   :  { %v372_v40 = vpop.f32.mrb[0].mxu1 }
  0xe1   :  { %v376_v41 = vadd.f32 %v372_v40, %v279_v39  ;;  %v1405_v42 = vpop.f32.mrb[1].mxu1 }
  0xe3   :  { %1610 = vtanh.f32 %v376_v41  ;;  %v1321_v44 = vmul.f32 -1.442695, %v376_v41 }
  0xe5   :  { %1612 = vpow2.f32 %v1321_v44 }
  0xed   :  { %v1611_v43 = vpop.eup %1610 }
  0xee   :  { %390 = vrot.lane.b32.xlu1 %v1611_v43, %s1710_s1 }
  0xef   :  { %v1613_v45 = vpop.eup %1612 }
  0xf0   :  { %v380_v46 = vadd.f32 1.0, %v1613_v45 }
  0xf2   :  { %1614 = vrcp.f32 %v380_v46 }
  0xfc   :  { %v1615_v47 = vpop.eup %1614 }
  0xfd   :  { %v388_v51 = vmul.f32 %v1615_v47, %v386_v50 }
 0x160   :  { %v391_v48 = vpop.permute.xlu1 %390 }
 0x161   :  { %v393_v49 = vmul.f32 %v1615_v47, %v391_v48 }
 0x163   :  { %395 = vrot.lane.b32.xlu1 %v393_v49, %s1709_s2 }
 0x1d5   :  { %v396_v52 = vpop.permute.xlu1 %395 }
 0x1d6   :  { %v398_v53 = vadd.f32 %v396_v52, %v388_v51 }
 0x1d8   :  { %1616 = vtanh.f32 %v398_v53 }
 0x1e2   :  { %v1617_v54 = vpop.eup %1616 }
 0x1e3   :  { %401 = vrot.lane.b32.xlu0 %v1617_v54, %s1710_s1 }
 0x1e7   :  { %78 = vperm.xlu0 %1581, %v56_v55  }
 0x1eb   :  { %1584 = vset.pattern.permute.xlu0 %v1708_v13 }
 0x1ec   :  { %240 = vperm.xlu0 %1584, %v56_v55  }
 0x1f0   :  { %1585 = vset.pattern.permute.xlu0 %v1705_v9 }
 0x255   :  { %v402_v56 = vpop.permute.xlu0 %401 }
 0x256   :  { %v404_v57 = vmul.f32 %v1615_v47, %v402_v56 }
 0x258   :  { %406 = vrot.lane.b32.xlu1 %v404_v57, %s1709_s2 }
 0x25c   :  { %136 = vperm.xlu1 %1582, %v56_v55  }
 0x260   :  { %1583 = vset.pattern.permute.xlu1 %v1706_v10 }
 0x261   :  { %188 = vperm.xlu1 %1583, %v56_v55  }
 0x265   :  { %1586 = vset.pattern.permute.xlu1 %v1707_v12 }
 0x266   :  { %v79_v59 = vpop.permute.xlu0 %78 }
 0x267   :  { %v116_v61 = vmul.f32 %v1810_v21, %v79_v59 }
 0x269   :  { %v124_v63 = vadd.f32 %v1820_v26, %v116_v61 }
 0x26b   :  { %v241_v3 = vpop.permute.xlu0 %240 }
 0x26c   :  { %v272_v8 = vmul.f32 %v1828_v35, %v241_v3 }
 0x2ca   :  { %v407_v58 = vpop.permute.xlu1 %406 }
 0x2cb   :  { %409 = vst.msk [vmem:[#allocation3] sm:$0xff] %vm52_vm1, %v407_v58  ;;  %1415 = vmatmul.mubr.msk.f32.vlgmr.msra.gmra.mrb[2].mxu1 %vm52_vm1, %v407_v58 }
 0x2cc   :  { %1516 = vmatpush3.bf16.msra.mxu1 %v1761_v5  ;;  %1425 = vmatprep.mubr.msk.f32.mxu1 %vm1703_vm0, %v1704_v7 }
 0x2cd   :  { %1517 = vmatprep.subr.bf16.mxu1 %v1702_v4 }
 0x2d0   :  { %1519 = vmatpush3.bf16.msra.mxu1 %v1778_v11 }
 0x2d1   :  { %1520 = vmatprep.subr.bf16.mxu1 %v1702_v4 }
 0x2db   :  { %v137_v60 = vpop.permute.xlu1 %136 }
 0x2dc   :  { %v168_v62 = vmul.f32 %v1815_v25, %v137_v60 }
 0x2de   :  { %v176_v1 = vadd.f32 %v168_v62, %v124_v63 }
 0x2e0   :  { %v189_v0 = vpop.permute.xlu1 %188 }
 0x2e1   :  { %v220_v2 = vmul.f32 %v1823_v30, %v189_v0 }
 0x2e3   :  { %v228_v6 = vadd.f32 %v220_v2, %v176_v1  ;;  %v58_v2 = vld [vmem:[%s2033_s0 + $0x18] sm:$0xff] }
 0x2e5   :  { %v280_v14 = vadd.f32 %v272_v8, %v228_v6 }
 0x39e   :  { %v480_v15 = vpop.f32.mrb[2].mxu1 }
 0x39f   :  { %v484_v16 = vadd.f32 %v480_v15, %v280_v14  ;;  %v1416_v19 = vpop.f32.mrb[3].mxu1 }
 0x3a1   :  { %1618 = vtanh.f32 %v484_v16  ;;  %v1323_v22 = vmul.f32 -1.442695, %v484_v16 }
 0x3a3   :  { %1620 = vpow2.f32 %v1323_v22 }
 0x3ab   :  { %v1619_v20 = vpop.eup %1618 }
 0x3ac   :  { %494 = vrot.lane.b32.xlu1 %v1619_v20, %s1710_s1 }
 0x3ad   :  { %v1621_v23 = vpop.eup %1620 }
 0x3ae   :  { %v488_v24 = vadd.f32 1.0, %v1621_v23 }
 0x3b0   :  { %1622 = vrcp.f32 %v488_v24 }
 0x3ba   :  { %v1623_v27 = vpop.eup %1622 }
 0x3bb   :  { %v492_v31 = vmul.f32 %v1623_v27, %v398_v53 }
 0x41e   :  { %v495_v28 = vpop.permute.xlu1 %494 }
 0x41f   :  { %v497_v29 = vmul.f32 %v1623_v27, %v495_v28 }
 0x421   :  { %499 = vrot.lane.b32.xlu1 %v497_v29, %s1709_s2 }
 0x493   :  { %v500_v32 = vpop.permute.xlu1 %499 }
 0x494   :  { %v502_v33 = vadd.f32 %v500_v32, %v492_v31 }
 0x496   :  { %1624 = vtanh.f32 %v502_v33 }
 0x4a0   :  { %v1625_v34 = vpop.eup %1624 }
 0x4a1   :  { %505 = vrot.lane.b32.xlu0 %v1625_v34, %s1710_s1 }
 0x4a5   :  { %83 = vperm.xlu0 %1585, %v57_v36  }
 0x4a9   :  { %1588 = vset.pattern.permute.xlu0 %v1708_v13 }
 0x4aa   :  { %244 = vperm.xlu0 %1588, %v57_v36  }
 0x4ae   :  { %1589 = vset.pattern.permute.xlu0 %v1705_v9 }
 0x513   :  { %v506_v37 = vpop.permute.xlu0 %505 }
 0x514   :  { %v508_v38 = vmul.f32 %v1623_v27, %v506_v37 }
 0x516   :  { %510 = vrot.lane.b32.xlu1 %v508_v38, %s1709_s2 }
 0x51a   :  { %140 = vperm.xlu1 %1586, %v57_v36  }
 0x51e   :  { %1587 = vset.pattern.permute.xlu1 %v1706_v10 }
 0x51f   :  { %192 = vperm.xlu1 %1587, %v57_v36  }
 0x523   :  { %1590 = vset.pattern.permute.xlu1 %v1707_v12 }
 0x524   :  { %v84_v40 = vpop.permute.xlu0 %83 }
 0x525   :  { %v117_v42 = vmul.f32 %v1810_v21, %v84_v40 }
 0x527   :  { %v125_v44 = vadd.f32 %v1820_v26, %v117_v42 }
 0x529   :  { %v245_v48 = vpop.permute.xlu0 %244 }
 0x52a   :  { %v273_v50 = vmul.f32 %v1828_v35, %v245_v48 }
 0x588   :  { %v511_v39 = vpop.permute.xlu1 %510 }
 0x589   :  { %514 = vst.msk [vmem:[#allocation3 + $0x8] sm:$0xff] %vm52_vm1, %v511_v39  ;;  %1426 = vmatmul.mubr.msk.f32.vlgmr.msra.gmra.mrb[4].mxu1 %vm52_vm1, %v511_v39 }
 0x58a   :  { %1522 = vmatpush3.bf16.msra.mxu1 %v1761_v5  ;;  %1436 = vmatprep.mubr.msk.f32.mxu1 %vm1703_vm0, %v1704_v7 }
 0x58b   :  { %1523 = vmatprep.subr.bf16.mxu1 %v1702_v4 }
 0x58e   :  { %1525 = vmatpush3.bf16.msra.mxu1 %v1778_v11 }
 0x58f   :  { %1532 = vmatprep.subr.bf16.mxu1 %v1702_v4 }
 0x599   :  { %v141_v41 = vpop.permute.xlu1 %140 }
 0x59a   :  { %v169_v43 = vmul.f32 %v1815_v25, %v141_v41 }
 0x59c   :  { %v177_v46 = vadd.f32 %v169_v43, %v125_v44 }
 0x59e   :  { %v193_v45 = vpop.permute.xlu1 %192 }
 0x59f   :  { %v221_v47 = vmul.f32 %v1823_v30, %v193_v45 }
 0x5a1   :  { %v229_v49 = vadd.f32 %v221_v47, %v177_v46  ;;  %v59_v47 = vld [vmem:[%s2033_s0 + $0x20] sm:$0xff] }
 0x5a3   :  { %v281_v51 = vadd.f32 %v273_v50, %v229_v49 }
 0x65c   :  { %v585_v52 = vpop.f32.mrb[4].mxu1 }
 0x65d   :  { %v589_v53 = vadd.f32 %v585_v52, %v281_v51  ;;  %v1427_v54 = vpop.f32.mrb[5].mxu1 }
 0x65f   :  { %1626 = vtanh.f32 %v589_v53  ;;  %v1325_v56 = vmul.f32 -1.442695, %v589_v53 }
 0x661   :  { %1628 = vpow2.f32 %v1325_v56 }
 0x669   :  { %v1627_v55 = vpop.eup %1626 }
 0x66a   :  { %599 = vrot.lane.b32.xlu1 %v1627_v55, %s1710_s1 }
 0x66b   :  { %v1629_v57 = vpop.eup %1628 }
 0x66c   :  { %v593_v58 = vadd.f32 1.0, %v1629_v57 }
 0x66e   :  { %1630 = vrcp.f32 %v593_v58 }
 0x678   :  { %v1631_v59 = vpop.eup %1630 }
 0x679   :  { %v597_v62 = vmul.f32 %v1631_v59, %v502_v33 }
 0x6dc   :  { %v600_v60 = vpop.permute.xlu1 %599 }
 0x6dd   :  { %v602_v61 = vmul.f32 %v1631_v59, %v600_v60 }
 0x6df   :  { %604 = vrot.lane.b32.xlu1 %v602_v61, %s1709_s2 }
 0x751   :  { %v605_v63 = vpop.permute.xlu1 %604 }
 0x752   :  { %v607_v0 = vadd.f32 %v605_v63, %v597_v62 }
 0x754   :  { %1632 = vtanh.f32 %v607_v0 }
 0x75e   :  { %v1633_v1 = vpop.eup %1632 }
 0x75f   :  { %610 = vrot.lane.b32.xlu0 %v1633_v1, %s1710_s1 }
 0x763   :  { %88 = vperm.xlu0 %1589, %v58_v2  }
 0x767   :  { %1592 = vset.pattern.permute.xlu0 %v1708_v13 }
 0x768   :  { %248 = vperm.xlu0 %1592, %v58_v2  }
 0x76c   :  { %1593 = vset.pattern.permute.xlu0 %v1705_v9 }
 0x7d1   :  { %v611_v3 = vpop.permute.xlu0 %610 }
 0x7d2   :  { %v613_v6 = vmul.f32 %v1631_v59, %v611_v3 }
 0x7d4   :  { %615 = vrot.lane.b32.xlu1 %v613_v6, %s1709_s2 }
 0x7d8   :  { %144 = vperm.xlu1 %1590, %v58_v2  }
 0x7dc   :  { %1591 = vset.pattern.permute.xlu1 %v1706_v10 }
 0x7dd   :  { %196 = vperm.xlu1 %1591, %v58_v2  }
 0x7e1   :  { %1594 = vset.pattern.permute.xlu1 %v1707_v12 }
 0x7e2   :  { %v89_v14 = vpop.permute.xlu0 %88 }
 0x7e3   :  { %v118_v16 = vmul.f32 %v1810_v21, %v89_v14 }
 0x7e5   :  { %v126_v20 = vadd.f32 %v1820_v26, %v118_v16 }
 0x7e7   :  { %v249_v27 = vpop.permute.xlu0 %248 }
 0x7e8   :  { %v274_v29 = vmul.f32 %v1828_v35, %v249_v27 }
 0x846   :  { %v616_v8 = vpop.permute.xlu1 %615 }
 0x847   :  { %619 = vst.msk [vmem:[#allocation3 + $0x10] sm:$0xff] %vm52_vm1, %v616_v8  ;;  %1437 = vmatmul.mubr.msk.f32.vlgmr.msra.gmra.mrb[6].mxu1 %vm52_vm1, %v616_v8 }
 0x848   :  { %1534 = vmatpush3.bf16.msra.mxu1 %v1761_v5  ;;  %1458 = vmatprep.mubr.msk.f32.mxu1 %vm1703_vm0, %v1704_v7 }
 0x849   :  { %1535 = vmatprep.subr.bf16.mxu1 %v1702_v4 }
 0x84c   :  { %1537 = vmatpush3.bf16.msra.mxu1 %v1778_v11 }
 0x84d   :  { %1544 = vmatprep.subr.bf16.mxu1 %v1702_v4 }
 0x857   :  { %v145_v15 = vpop.permute.xlu1 %144 }
 0x858   :  { %v170_v19 = vmul.f32 %v1815_v25, %v145_v15 }
 0x85a   :  { %v178_v23 = vadd.f32 %v170_v19, %v126_v20 }
 0x85c   :  { %v197_v22 = vpop.permute.xlu1 %196 }
 0x85d   :  { %v222_v24 = vmul.f32 %v1823_v30, %v197_v22 }
 0x85f   :  { %v230_v28 = vadd.f32 %v222_v24, %v178_v23  ;;  %v60_v24 = vld [vmem:[%s2033_s0 + $0x28] sm:$0xff] }
 0x861   :  { %v282_v31 = vadd.f32 %v274_v29, %v230_v28 }
 0x91a   :  { %v690_v32 = vpop.f32.mrb[6].mxu1 }
 0x91b   :  { %v694_v33 = vadd.f32 %v690_v32, %v282_v31  ;;  %v1438_v34 = vpop.f32.mrb[7].mxu1 }
 0x91d   :  { %1634 = vtanh.f32 %v694_v33  ;;  %v1327_v37 = vmul.f32 -1.442695, %v694_v33 }
 0x91f   :  { %1636 = vpow2.f32 %v1327_v37 }
 0x927   :  { %v1635_v36 = vpop.eup %1634 }
 0x928   :  { %704 = vrot.lane.b32.xlu1 %v1635_v36, %s1710_s1 }
 0x929   :  { %v1637_v38 = vpop.eup %1636 }
 0x92a   :  { %v698_v39 = vadd.f32 1.0, %v1637_v38 }
 0x92c   :  { %1638 = vrcp.f32 %v698_v39 }
 0x936   :  { %v1639_v40 = vpop.eup %1638 }
 0x937   :  { %v702_v43 = vmul.f32 %v1639_v40, %v607_v0 }
 0x99a   :  { %v705_v41 = vpop.permute.xlu1 %704 }
 0x99b   :  { %v707_v42 = vmul.f32 %v1639_v40, %v705_v41 }
 0x99d   :  { %709 = vrot.lane.b32.xlu1 %v707_v42, %s1709_s2 }
 0xa0f   :  { %v710_v44 = vpop.permute.xlu1 %709 }
 0xa10   :  { %v712_v45 = vadd.f32 %v710_v44, %v702_v43 }
 0xa12   :  { %1640 = vtanh.f32 %v712_v45 }
 0xa1c   :  { %v1641_v46 = vpop.eup %1640 }
 0xa1d   :  { %715 = vrot.lane.b32.xlu0 %v1641_v46, %s1710_s1 }
 0xa21   :  { %93 = vperm.xlu0 %1593, %v59_v47  }
 0xa25   :  { %1596 = vset.pattern.permute.xlu0 %v1708_v13 }
 0xa26   :  { %252 = vperm.xlu0 %1596, %v59_v47  }
 0xa2a   :  { %1597 = vset.pattern.permute.xlu0 %v1705_v9 }
 0xa8f   :  { %v716_v48 = vpop.permute.xlu0 %715 }
 0xa90   :  { %v718_v49 = vmul.f32 %v1639_v40, %v716_v48 }
 0xa92   :  { %720 = vrot.lane.b32.xlu1 %v718_v49, %s1709_s2 }
 0xa96   :  { %148 = vperm.xlu1 %1594, %v59_v47  }
 0xa9a   :  { %1595 = vset.pattern.permute.xlu1 %v1706_v10 }
 0xa9b   :  { %200 = vperm.xlu1 %1595, %v59_v47  }
 0xa9f   :  { %1598 = vset.pattern.permute.xlu1 %v1707_v12 }
 0xaa0   :  { %v94_v51 = vpop.permute.xlu0 %93 }
 0xaa1   :  { %v119_v53 = vmul.f32 %v1810_v21, %v94_v51 }
 0xaa3   :  { %v127_v55 = vadd.f32 %v1820_v26, %v119_v53 }
 0xaa5   :  { %v253_v59 = vpop.permute.xlu0 %252 }
 0xaa6   :  { %v275_v61 = vmul.f32 %v1828_v35, %v253_v59  ;;  %v1152_v59 = vld [vmem:[#allocation3 + $0x8] sm:$0xff] }
 0xaa7   :  { %vm1160_vm2 = vcmp.gt.f32.partialorder %v1152_v59, 0.0 }
 0xb04   :  { %v721_v50 = vpop.permute.xlu1 %720 }
 0xb05   :  { %724 = vst.msk [vmem:[#allocation3 + $0x18] sm:$0xff] %vm52_vm1, %v721_v50  ;;  %1448 = vmatmul.mubr.msk.f32.vlgmr.msra.gmra.mrb[0].mxu0 %vm52_vm1, %v721_v50 }
 0xb06   :  { %1540 = vmatpush3.bf16.msra.mxu0 %v1761_v5  ;;  %1469 = vmatprep.mubr.msk.f32.mxu0 %vm1703_vm0, %v1704_v7 }
 0xb07   :  { %1541 = vmatprep.subr.bf16.mxu0 %v1702_v4 }
 0xb0a   :  { %1543 = vmatpush3.bf16.msra.mxu0 %v1778_v11 }
 0xb0b   :  { %1550 = vmatprep.subr.bf16.mxu0 %v1702_v4 }
 0xb15   :  { %v149_v52 = vpop.permute.xlu1 %148 }
 0xb16   :  { %v171_v54 = vmul.f32 %v1815_v25, %v149_v52 }
 0xb18   :  { %v179_v57 = vadd.f32 %v171_v54, %v127_v55 }
 0xb1a   :  { %v201_v56 = vpop.permute.xlu1 %200 }
 0xb1b   :  { %v223_v58 = vmul.f32 %v1823_v30, %v201_v56 }
 0xb1d   :  { %v231_v60 = vadd.f32 %v223_v58, %v179_v57  ;;  %v61_v58 = vld [vmem:[%s2033_s0 + $0x30] sm:$0xff] }
 0xb1f   :  { %v283_v62 = vadd.f32 %v275_v61, %v231_v60  ;;  %v1151_v60 = vld [vmem:[#allocation3] sm:$0xff]  ;;  %v1168_v61 = vmul.f32 0.01, %v1152_v59 }
 0xb20   :  { %vm1159_vm3 = vcmp.gt.f32.partialorder %v1151_v60, 0.0 }
 0xbd8   :  { %v795_v63 = vpop.f32.mrb[0].mxu0 }
 0xbd9   :  { %v799_v0 = vadd.f32 %v795_v63, %v283_v62  ;;  %v1449_v1 = vpop.f32.mrb[1].mxu0  ;;  %v1167_v62 = vmul.f32 0.01, %v1151_v60  ;;  %v1176_v63 = vsel %vm1160_vm2, %v1152_v59, %v1168_v61 }
 0xbdb   :  { %1642 = vtanh.f32 %v799_v0  ;;  %v1329_v3 = vmul.f32 -1.442695, %v799_v0  ;;  %v1154_v0 = vld [vmem:[#allocation3 + $0x18] sm:$0xff]  ;;  %v1175_v1 = vsel %vm1159_vm3, %v1151_v60, %v1167_v62 }
 0xbdc   :  { %vm1162_vm5 = vcmp.gt.f32.partialorder %v1154_v0, 0.0 }
 0xbdd   :  { %1644 = vpow2.f32 %v1329_v3 }
 0xbe5   :  { %v1643_v2 = vpop.eup %1642 }
 0xbe6   :  { %809 = vrot.lane.b32.xlu1 %v1643_v2, %s1710_s1 }
 0xbe7   :  { %v1645_v6 = vpop.eup %1644 }
 0xbe8   :  { %v803_v8 = vadd.f32 1.0, %v1645_v6  ;;  %v1551_v6 = vpack.c.bf16 %v1176_v63, %v1175_v1 }
 0xbea   :  { %1646 = vrcp.f32 %v803_v8  ;;  %v1170_v8 = vmul.f32 0.01, %v1154_v0 }
 0xbf4   :  { %v1647_v14 = vpop.eup %1646 }
 0xbf5   :  { %v807_v19 = vmul.f32 %v1647_v14, %v712_v45 }
 0xc58   :  { %v810_v15 = vpop.permute.xlu1 %809 }
 0xc59   :  { %v812_v16 = vmul.f32 %v1647_v14, %v810_v15  ;;  %v1178_v15 = vsel %vm1162_vm5, %v1154_v0, %v1170_v8 }
 0xc5b   :  { %814 = vrot.lane.b32.xlu1 %v812_v16, %s1709_s2 }
 0xccd   :  { %v815_v20 = vpop.permute.xlu1 %814 }
 0xcce   :  { %v817_v22 = vadd.f32 %v815_v20, %v807_v19 }
 0xcd0   :  { %1648 = vtanh.f32 %v817_v22 }
 0xcda   :  { %v1649_v23 = vpop.eup %1648 }
 0xcdb   :  { %820 = vrot.lane.b32.xlu0 %v1649_v23, %s1710_s1 }
 0xcdf   :  { %98 = vperm.xlu0 %1597, %v60_v24  }
 0xce3   :  { %1600 = vset.pattern.permute.xlu0 %v1708_v13 }
 0xce4   :  { %256 = vperm.xlu0 %1600, %v60_v24  }
 0xce8   :  { %1601 = vset.pattern.permute.xlu0 %v1705_v9 }
 0xd4d   :  { %v821_v27 = vpop.permute.xlu0 %820 }
 0xd4e   :  { %v823_v28 = vmul.f32 %v1647_v14, %v821_v27 }
 0xd50   :  { %825 = vrot.lane.b32.xlu1 %v823_v28, %s1709_s2 }
 0xd54   :  { %152 = vperm.xlu1 %1598, %v60_v24  }
 0xd58   :  { %1599 = vset.pattern.permute.xlu1 %v1706_v10 }
 0xd59   :  { %204 = vperm.xlu1 %1599, %v60_v24  }
 0xd5d   :  { %1602 = vset.pattern.permute.xlu1 %v1707_v12 }
 0xd5e   :  { %v99_v31 = vpop.permute.xlu0 %98 }
 0xd5f   :  { %v120_v33 = vmul.f32 %v1810_v21, %v99_v31 }
 0xd61   :  { %v128_v36 = vadd.f32 %v1820_v26, %v120_v33 }
 0xdc2   :  { %v826_v29 = vpop.permute.xlu1 %825 }
 0xdc3   :  { %829 = vst.msk [vmem:[#allocation3 + $0x20] sm:$0xff] %vm52_vm1, %v826_v29  ;;  %1459 = vmatmul.mubr.msk.f32.vlgmr.msra.gmra.mrb[8].mxu1 %vm52_vm1, %v826_v29 }
 0xdc4   :  { %1546 = vmatpush3.bf16.msra.mxu1 %v1761_v5  ;;  %1480 = vmatprep.mubr.msk.f32.mxu1 %vm1703_vm0, %v1704_v7  ;;  %v257_v5 = vpop.permute.xlu0 %256 }
 0xdc5   :  { %1547 = vmatprep.subr.bf16.mxu1 %v1702_v4  ;;  %v276_v41 = vmul.f32 %v1828_v35, %v257_v5 }
 0xdc8   :  { %1549 = vmatpush3.bf16.msra.mxu1 %v1778_v11 }
 0xdca   :  { %v1155_v20 = vld [vmem:[#allocation3 + $0x20] sm:$0xff] }
 0xdcb   :  { %v1171_v24 = vmul.f32 0.01, %v1155_v20  ;;  %vm1163_vm8 = vcmp.gt.f32.partialorder %v1155_v20, 0.0 }
 0xdd3   :  { %v153_v32 = vpop.permute.xlu1 %152 }
 0xdd4   :  { %v172_v34 = vmul.f32 %v1815_v25, %v153_v32 }
 0xdd6   :  { %v180_v38 = vadd.f32 %v172_v34, %v128_v36 }
 0xdd8   :  { %v205_v37 = vpop.permute.xlu1 %204 }
 0xdd9   :  { %v224_v39 = vmul.f32 %v1823_v30, %v205_v37 }
 0xddb   :  { %v232_v40 = vadd.f32 %v224_v39, %v180_v38 }
 0xddd   :  { %v284_v42 = vadd.f32 %v276_v41, %v232_v40 }
 0xe96   :  { %v900_v43 = vpop.f32.mrb[8].mxu1 }
 0xe97   :  { %v904_v44 = vadd.f32 %v900_v43, %v284_v42  ;;  %v1460_v11 = vpop.f32.mrb[9].mxu1 }
 0xe99   :  { %1650 = vtanh.f32 %v904_v44  ;;  %v1331_v46 = vmul.f32 -1.442695, %v904_v44 }
 0xe9b   :  { %1652 = vpow2.f32 %v1331_v46 }
 0xea3   :  { %v1651_v45 = vpop.eup %1650 }
 0xea4   :  { %914 = vrot.lane.b32.xlu1 %v1651_v45, %s1710_s1 }
 0xea5   :  { %v1653_v47 = vpop.eup %1652 }
 0xea6   :  { %v908_v48 = vadd.f32 1.0, %v1653_v47 }
 0xea8   :  { %1654 = vrcp.f32 %v908_v48 }
 0xeb2   :  { %v1655_v49 = vpop.eup %1654 }
 0xeb3   :  { %v912_v52 = vmul.f32 %v1655_v49, %v817_v22 }
 0xf16   :  { %v915_v50 = vpop.permute.xlu1 %914 }
 0xf17   :  { %v917_v51 = vmul.f32 %v1655_v49, %v915_v50 }
 0xf19   :  { %919 = vrot.lane.b32.xlu1 %v917_v51, %s1709_s2 }
 0xf8b   :  { %v920_v53 = vpop.permute.xlu1 %919 }
 0xf8c   :  { %v1952_v54 = vadd.f32 %v920_v53, %v912_v52 }
 0xf8e   :  { %1656 = vtanh.f32 %v1952_v54 }
 0xf98   :  { %v1657_v55 = vpop.eup %1656 }
 0xf99   :  { %925 = vrot.lane.b32.xlu0 %v1657_v55, %s1710_s1  ;;  %v62_v55 = vld [vmem:[%s2033_s0 + $0x38] sm:$0xff]  ;;  %s1711_s0 = smov 96  }
 0xf9d   :  { %103 = vperm.xlu0 %1601, %v61_v58  }
 0xfa1   :  { %1604 = vset.pattern.permute.xlu0 %v1708_v13 }
 0xfa2   :  { %260 = vperm.xlu0 %1604, %v61_v58  }
 0xfa6   :  { %1605 = vset.pattern.permute.xlu0 %v1705_v9 }
0x100b   :  { %v926_v56 = vpop.permute.xlu0 %925 }
0x100c   :  { %v928_v57 = vmul.f32 %v1655_v49, %v926_v56 }
0x100e   :  { %930 = vrot.lane.b32.xlu1 %v928_v57, %s1709_s2 }
0x1012   :  { %156 = vperm.xlu1 %1602, %v61_v58  }
0x1016   :  { %1603 = vset.pattern.permute.xlu1 %v1706_v10 }
0x1017   :  { %208 = vperm.xlu1 %1603, %v61_v58  }
0x101b   :  { %1606 = vset.pattern.permute.xlu1 %v1707_v12  ;;  %v1153_v12 = vld [vmem:[#allocation3 + $0x10] sm:$0xff] }
0x101c   :  { %v1169_v14 = vmul.f32 0.01, %v1153_v12  ;;  %vm1161_vm6 = vcmp.gt.f32.partialorder %v1153_v12, 0.0  ;;  %v104_v29 = vpop.permute.xlu0 %103 }
0x101d   :  { %v121_v32 = vmul.f32 %v1810_v21, %v104_v29 }
0x101e   :  { %v1177_v16 = vsel %vm1161_vm6, %v1153_v12, %v1169_v14 }
0x101f   :  { %v1555_v19 = vpack.c.bf16 %v1178_v15, %v1177_v16  ;;  %v129_v34 = vadd.f32 %v1820_v26, %v121_v32 }
0x1021   :  { %v261_v39 = vpop.permute.xlu0 %260 }
0x1022   :  { %v277_v40 = vmul.f32 %v1828_v35, %v261_v39 }
0x1080   :  { %v931_v3 = vpop.permute.xlu1 %930 }
0x1081   :  { %934 = vst.msk [vmem:[#allocation3 + $0x28] sm:$0xff] %vm52_vm1, %v931_v3  ;;  %1470 = vmatmul.mubr.msk.f32.vlgmr.msra.gmra.mrb[2].mxu0 %vm52_vm1, %v931_v3 }
0x1082   :  { %1553 = vmatpush3.bf16.xpose.msk.msra.mxu0 %vm1966_vm4, %v1551_v6  ;;  %1499 = vmatprep.mubr.msk.f32.mxu0 %vm1703_vm0, %v1704_v7  ;;  %v1179_v7 = vsel %vm1163_vm8, %v1155_v20, %v1171_v24 }
0x1083   :  { %1554 = vmatprep.subr.bf16.mxu0 %v1702_v4 }
0x1088   :  { %v1156_v22 = vld [vmem:[#allocation3 + $0x28] sm:$0xff] }
0x1089   :  { %v1172_v23 = vmul.f32 0.01, %v1156_v22  ;;  %vm1164_vm7 = vcmp.gt.f32.partialorder %v1156_v22, 0.0 }
0x108a   :  { %1557 = vmatpush3.bf16.xpose.msk.msra.mxu0 %vm1966_vm4, %v1555_v19 }
0x108b   :  { %1558 = vmatprep.subr.bf16.mxu0 %v1702_v4  ;;  %v1180_v27 = vsel %vm1164_vm7, %v1156_v22, %v1172_v23 }
0x108c   :  { %v1559_v28 = vpack.c.bf16 %v1180_v27, %v1179_v7  ;;  %v1184_v27 = vld [vmem:[#allocation6] sm:$0x1] }
0x1091   :  { %v157_v31 = vpop.permute.xlu1 %156 }
0x1092   :  { %1561 = vmatpush3.bf16.xpose.msk.msra.mxu0 %vm1966_vm4, %v1559_v28  ;;  %v173_v33 = vmul.f32 %v1815_v25, %v157_v31 }
0x1093   :  { %1562 = vmatprep.subr.bf16.mxu0 %v1702_v4 }
0x1094   :  { %v181_v37 = vadd.f32 %v173_v33, %v129_v34 }
0x1096   :  { %v209_v36 = vpop.permute.xlu1 %208 }
0x1097   :  { %v225_v38 = vmul.f32 %v1823_v30, %v209_v36 }
0x1099   :  { %v233_v5 = vadd.f32 %v225_v38, %v181_v37  ;;  %v1183_v38 = vld [vmem:[%s2037_s4] sm:$0x1]  ;;  %s1678_s4 = scalar_lea.vmem %s1306_s28, 16 }
0x109a   :  { %p1679_p0 = scmp.ne.s32.totalorder %s1306_s28, %s1678_s4  ;;  %p1684_p2 = scmp.lt.s32.totalorder %s1682_s29, %s1678_s4 }
0x109b   :  { %v285_v41 = vadd.f32 %v277_v40, %v233_v5 }
0x109c   :  { %p1685_p3 = por %p1684_p2, %p1683_p1 }
0x109e   :  { %p1686_p4 = pnand %p1685_p3, %p1679_p0 }
0x1154   :  { %v1005_v42 = vpop.f32.mrb[2].mxu0 }
0x1155   :  { %v1009_v43 = vadd.f32 %v1005_v42, %v285_v41  ;;  %v1471_v4 = vpop.f32.mrb[3].mxu0 }
0x1157   :  { %1658 = vtanh.f32 %v1009_v43  ;;  %v1333_v11 = vmul.f32 -1.442695, %v1009_v43 }
0x1159   :  { %1660 = vpow2.f32 %v1333_v11 }
0x1161   :  { %v1659_v44 = vpop.eup %1658 }
0x1162   :  { %1019 = vrot.lane.b32.xlu1 %v1659_v44, %s1710_s1 }
0x1163   :  { %v1661_v45 = vpop.eup %1660 }
0x1164   :  { %v1013_v46 = vadd.f32 1.0, %v1661_v45 }
0x1166   :  { %1662 = vrcp.f32 %v1013_v46 }
0x1170   :  { %v1663_v47 = vpop.eup %1662 }
0x1171   :  { %v1017_v50 = vmul.f32 %v1663_v47, %v1952_v54 }
0x11d4   :  { %v1020_v48 = vpop.permute.xlu1 %1019 }
0x11d5   :  { %v1022_v49 = vmul.f32 %v1663_v47, %v1020_v48 }
0x11d7   :  { %1024 = vrot.lane.b32.xlu1 %v1022_v49, %s1709_s2 }
0x1249   :  { %v1025_v51 = vpop.permute.xlu1 %1024 }
0x124a   :  { %v1027_v52 = vadd.f32 %v1025_v51, %v1017_v50 }
0x124c   :  { %1664 = vtanh.f32 %v1027_v52 }
0x1256   :  { %v1665_v53 = vpop.eup %1664 }
0x1257   :  { %1030 = vrot.lane.b32.xlu0 %v1665_v53, %s1710_s1 }
0x125b   :  { %108 = vperm.xlu0 %1605, %v62_v55  }
0x125f   :  { %1608 = vset.pattern.permute.xlu0 %v1708_v13 }
0x1260   :  { %264 = vperm.xlu0 %1608, %v62_v55  }
0x1264   :  { %1609 = vset.pattern.permute.xlu0 %v1705_v9 }
0x12c9   :  { %v1031_v56 = vpop.permute.xlu0 %1030 }
0x12ca   :  { %v1033_v57 = vmul.f32 %v1663_v47, %v1031_v56 }
0x12cc   :  { %1035 = vrot.lane.b32.xlu1 %v1033_v57, %s1709_s2 }
0x12d0   :  { %160 = vperm.xlu1 %1606, %v62_v55  }
0x12d4   :  { %1607 = vset.pattern.permute.xlu1 %v1706_v10 }
0x12d5   :  { %212 = vperm.xlu1 %1607, %v62_v55  }
0x12da   :  { %v109_v58 = vpop.permute.xlu0 %108 }
0x12db   :  { %v122_v13 = vmul.f32 %v1810_v21, %v109_v58 }
0x12dd   :  { %v130_v9 = vadd.f32 %v1820_v26, %v122_v13 }
0x12df   :  { %v265_v0 = vpop.permute.xlu0 %264 }
0x12e0   :  { %v278_v1 = vmul.f32 %v1828_v35, %v265_v0 }
0x133e   :  { %v1036_v54 = vpop.permute.xlu1 %1035 }
0x133f   :  { %1039 = vst.msk [vmem:[#allocation3 + $0x30] sm:$0xff] %vm52_vm1, %v1036_v54  ;;  %1481 = vmatmul.mubr.msk.f32.vlgmr.msra.gmra.mrb[10].mxu1 %vm52_vm1, %v1036_v54 }
0x1346   :  { %v1157_v29 = vld [vmem:[#allocation3 + $0x30] sm:$0xff] }
0x1347   :  { %v1173_v31 = vmul.f32 0.01, %v1157_v29  ;;  %vm1165_vm9 = vcmp.gt.f32.partialorder %v1157_v29, 0.0 }
0x1349   :  { %v1181_v34 = vsel %vm1165_vm9, %v1157_v29, %v1173_v31 }
0x134f   :  { %v161_v59 = vpop.permute.xlu1 %160 }
0x1350   :  { %v174_v60 = vmul.f32 %v1815_v25, %v161_v59 }
0x1352   :  { %v182_v62 = vadd.f32 %v174_v60, %v130_v9 }
0x1354   :  { %v213_v61 = vpop.permute.xlu1 %212 }
0x1355   :  { %v226_v63 = vmul.f32 %v1823_v30, %v213_v61 }
0x1357   :  { %v234_v10 = vadd.f32 %v226_v63, %v182_v62 }
0x1359   :  { %v286_v3 = vadd.f32 %v278_v1, %v234_v10 }
0x1412   :  { %v1110_v6 = vpop.f32.mrb[10].mxu1 }
0x1413   :  { %v1114_v12 = vadd.f32 %v1110_v6, %v286_v3  ;;  %v1482_v8 = vpop.f32.mrb[11].mxu1 }
0x1415   :  { %1666 = vtanh.f32 %v1114_v12  ;;  %v1335_v21 = vmul.f32 -1.442695, %v1114_v12 }
0x1417   :  { %1668 = vpow2.f32 %v1335_v21 }
0x141f   :  { %v1667_v14 = vpop.eup %1666 }
0x1420   :  { %1124 = vrot.lane.b32.xlu1 %v1667_v14, %s1710_s1 }
0x1421   :  { %v1669_v25 = vpop.eup %1668 }
0x1422   :  { %v1118_v26 = vadd.f32 1.0, %v1669_v25 }
0x1424   :  { %1670 = vrcp.f32 %v1118_v26 }
0x142e   :  { %v1671_v15 = vpop.eup %1670 }
0x142f   :  { %v1122_v19 = vmul.f32 %v1671_v15, %v1027_v52 }
0x1492   :  { %v1125_v16 = vpop.permute.xlu1 %1124 }
0x1493   :  { %v1127_v30 = vmul.f32 %v1671_v15, %v1125_v16 }
0x1495   :  { %1129 = vrot.lane.b32.xlu1 %v1127_v30, %s1709_s2 }
0x1507   :  { %v1130_v35 = vpop.permute.xlu1 %1129 }
0x1508   :  { %v1132_v20 = vadd.f32 %v1130_v35, %v1122_v19 }
0x150a   :  { %1672 = vtanh.f32 %v1132_v20 }
0x1514   :  { %v1673_v22 = vpop.eup %1672 }
0x1515   :  { %1135 = vrot.lane.b32.xlu0 %v1673_v22, %s1710_s1 }
0x1519   :  { %1187 = vperm.xlu0 %1609, %v1184_v27  }
0x1587   :  { %v1136_v23 = vpop.permute.xlu0 %1135 }
0x1588   :  { %v1138_v24 = vmul.f32 %v1671_v15, %v1136_v23 }
0x158a   :  { %1140 = vrot.lane.b32.xlu1 %v1138_v24, %s1709_s2 }
0x158e   :  { %1147 = vrot.lane.b32.xlu1 %v1132_v20, %s1711_s0 }
0x1598   :  { %v1188_v39 = vpop.permute.xlu0 %1187 }
0x1599   :  { %v1193_v5 = vrot.slane %v1188_v39, %v113_v18 }
0x15fc   :  { %v1141_v7 = vpop.permute.xlu1 %1140 }
0x15fd   :  { %1144 = vst.msk [vmem:[#allocation3 + $0x38] sm:$0xff] %vm52_vm1, %v1141_v7  ;;  %1145 = vst.msk [vmem:[#allocation4] sm:$0xff] %vm52_vm1, %v1141_v7 }
0x1600   :  { %v1148_v28 = vpop.permute.xlu1 %1147 }
0x1601   :  { %1150 = vst.msk [vmem:[#allocation5] sm:$0xff] %vm52_vm1, %v1148_v28 }
0x1604   :  { %v1158_v32 = vld [vmem:[#allocation3 + $0x38] sm:$0xff] }
0x1605   :  { %vm1166_vm10 = vcmp.gt.f32.partialorder %v1158_v32, 0.0  ;;  %v1174_v33 = vmul.f32 0.01, %v1158_v32 }
0x1607   :  { %v1182_v36 = vsel %vm1166_vm10, %v1158_v32, %v1174_v33 }
0x1608   :  { %v1563_v37 = vpack.c.bf16 %v1182_v36, %v1181_v34 }
0x160a   :  { %1565 = vmatpush3.bf16.xpose.msk.msra.mxu0 %vm1966_vm4, %v1563_v37 }
0x1611   :  { %1500 = vmatmul.mubr.msk.f32.vlgmr.msra.gmra.mrb[4].mxu0 %vm52_vm1, %v1183_v38 }
0x16e4   :  { %v1287_v40 = vpop.f32.mrb[4].mxu0 }
0x16e5   :  { %v1288_v41 = vadd.f32 %v1287_v40, %v1193_v5  ;;  %v1501_v42 = vpop.f32.mrb[5].mxu0 }
0x16e7   :  { %v1345_v43 = vmul.f32 -1.442695, %v1288_v41 }
0x16e9   :  { %1674 = vpow2.f32 %v1345_v43 }
0x16f3   :  { %v1675_v4 = vpop.eup %1674 }
0x16f4   :  { %v1294_v44 = vadd.f32 1.0, %v1675_v4 }
0x16f6   :  { %1676 = vrcp.f32 %v1294_v44 }
0x1700   :  { %v1677_v2 = vpop.eup %1676 }
0x1701   :  { %1298 = vst.msk [vmem:[#allocation7] sm:$0x1] %vm1297_vm11, %v1677_v2 }
0x1702   :  { %1689 = shalt.err (!%p1686_p4)
}
0x1703   :  { %s1690_s7 = scalar_lea.hbm %s2039_s6, 16 }
0x1704   :  { %p1691_p5 = scmp.ne.s32.totalorder %s2039_s6, %s1690_s7  ;;  %p1694_p6 = scmp.lt.u32.totalorder %s1690_s7, %s2039_s6 }
0x1706   :  { %p1696_p7 = pnand %p1694_p6, %p1691_p5 }
0x1708   :  { %1699 = shalt.err (!%p1696_p7)
}
0x1709   :  { %1308 = dma.vmem_to_hbm [thread:$0]  %s1306_s28, 16, %s2039_s6, [#allocation8]  }
0x170a   :  { %1700 = dma.done.wait [#allocation8], 16  }
0x170b   :  { %1701 = vsyncadd [#allocation8], 4294967280 }
0x170c   :  { %1312 = vsyncpa [#allocation8], 1 }

</bundles_post_ra>
